<compile_context>
chip_gen: v5e
topology: v5e:2x2
jax: 0.10.0
libtpu: 0.0.40
codegen_flags: <defaults>
</compile_context>

<pallas_src>
import functools

import jax
import jax.numpy as jnp
from jax.experimental import pallas as pl
from jax.experimental.pallas import tpu as pltpu


# --------------------------- fused multi-layer LSTM ---------------------------
def fused_lstm_kernel(gx0_ref, wih_r_ref, whh_ref, b_r_ref, o_ref,
                      h_scr, c_scr, acts_scr, proj_scr,
                      *, seq, batch, num_layers):
    """All LSTM layers, whole sequence, single kernel invocation.

    Gate-split layout (gate index is a leading axis, never the lane axis):
      gx0_ref:   (4, S*B, H)     layer-0 input projection incl. biases
      wih_r_ref: (L-1, 4, H, H)  per-gate transposed W_ih for layers 1..L-1
      whh_ref:   (L,   4, H, H)  per-gate transposed W_hh for all layers
      b_r_ref:   (L-1, 4, 1, H)  per-gate (b_ih + b_hh) for layers 1..L-1
      o_ref:     (S*B, H)        last-layer hidden states for all timesteps
    """
    B = batch
    last = num_layers - 1

    for layer in range(num_layers):            # static unroll over layers (L=3)
        h_scr[...] = jnp.zeros_like(h_scr)
        c_scr[...] = jnp.zeros_like(c_scr)

        def step(t, carry, layer=layer):
            row = pl.multiple_of(t * B, 8)     # B is padded to a multiple of 8
            h_prev = h_scr[...]

            def gate(g):
                # Per-gate recurrent matmul -> clean (B, H) tile; no
                # lane-crossing slice of a (B, 4H) gate block required.
                proj = (gx0_ref[g, pl.ds(row, B), :] if layer == 0
                        else proj_scr[g, pl.ds(row, B), :])
                return proj + jnp.dot(h_prev, whh_ref[layer, g],
                                      preferred_element_type=jnp.float32)

            # PyTorch gate order: input, forget, cell(g), output
            i_g = jax.nn.sigmoid(gate(0))
            f_g = jax.nn.sigmoid(gate(1))
            g_g = jnp.tanh(gate(2))
            o_g = jax.nn.sigmoid(gate(3))

            c_new = f_g * c_scr[...] + i_g * g_g
            h_new = o_g * jnp.tanh(c_new)
            c_scr[...] = c_new
            h_scr[...] = h_new
            if layer == last:
                # Last layer: write straight to the output block.
                o_ref[pl.ds(row, B), :] = h_new.astype(o_ref.dtype)
            else:
                acts_scr[pl.ds(row, B), :] = h_new
            return carry

        jax.lax.fori_loop(0, seq, step, 0)

        if layer < last:
            # Hoisted input projection for the NEXT layer: 4 big MXU matmuls
            # over all S*B rows at once (off the serial critical path).
            for g in range(4):
                proj_scr[g, :, :] = (
                    jnp.dot(acts_scr[...], wih_r_ref[layer, g],
                            preferred_element_type=jnp.float32)
                    + b_r_ref[layer, g]
                )


def lstm_model_forward(x, params):
    """Mirrors LSTM.forward: multi-layer LSTM, then per-timestep Linear."""
    S, B, I = x.shape
    layers = params["lstm"]
    L = len(layers)
    H = layers[0]["w_hh"].shape[1]
    Bp = ((B + 7) // 8) * 8                    # pad batch to sublane multiple

    x_p = x if Bp == B else jnp.pad(x, ((0, 0), (0, Bp - B), (0, 0)))
    x_flat = x_p.reshape(S * Bp, I).astype(jnp.float32)

    def gate_split_T(w):                       # (4H, D) -> (4, D, H)
        w = jnp.asarray(w, jnp.float32).reshape(4, H, -1)
        return jnp.transpose(w, (0, 2, 1))

    def gate_split_b(b_ih, b_hh):              # -> (4, 1, H)
        return (jnp.asarray(b_ih, jnp.float32)
                + jnp.asarray(b_hh, jnp.float32)).reshape(4, 1, H)

    # Hoisted layer-0 input projection (+ both biases) per gate: (4, S*Bp, H).
    l0 = layers[0]
    gx0 = (jnp.einsum("nd,gdh->gnh", x_flat, gate_split_T(l0["w_ih"]))
           + gate_split_b(l0["b_ih"], l0["b_hh"]))

    w_hh = jnp.stack([gate_split_T(p["w_hh"]) for p in layers])          # (L,4,H,H)
    if L > 1:
        w_ih_r = jnp.stack([gate_split_T(p["w_ih"]) for p in layers[1:]])     # (L-1,4,H,H)
        b_r = jnp.stack([gate_split_b(p["b_ih"], p["b_hh"])
                         for p in layers[1:]])                                # (L-1,4,1,H)
    else:
        w_ih_r = jnp.zeros((1, 4, H, H), jnp.float32)
        b_r = jnp.zeros((1, 4, 1, H), jnp.float32)

    kernel = functools.partial(fused_lstm_kernel, seq=S, batch=Bp, num_layers=L)
    h_out = pl.pallas_call(
        kernel,
        out_shape=jax.ShapeDtypeStruct((S * Bp, H), jnp.float32),
        grid=(1,),
        in_specs=[
            pl.BlockSpec(gx0.shape, lambda i: (0, 0, 0)),
            pl.BlockSpec(w_ih_r.shape, lambda i: (0, 0, 0, 0)),
            pl.BlockSpec(w_hh.shape, lambda i: (0, 0, 0, 0)),
            pl.BlockSpec(b_r.shape, lambda i: (0, 0, 0, 0)),
        ],
        out_specs=pl.BlockSpec((S * Bp, H), lambda i: (0, 0)),
        scratch_shapes=[
            pltpu.VMEM((Bp, H), jnp.float32),             # h state
            pltpu.VMEM((Bp, H), jnp.float32),             # c state
            pltpu.VMEM((S * Bp, H), jnp.float32),         # current layer outputs
            pltpu.VMEM((4, S * Bp, H), jnp.float32),      # per-gate projections
        ],
        compiler_params=pltpu.CompilerParams(dimension_semantics=("arbitrary",)),
    )(gx0.astype(jnp.float32), w_ih_r.astype(jnp.float32),
      w_hh.astype(jnp.float32), b_r.astype(jnp.float32))

    h_out = h_out.reshape(S, Bp, H)[:, :B, :]   # drop batch padding

    # Final per-timestep Linear (output_dim=1): plain XLA (a lane-dense Pallas
    # output is impossible at lane width 1; XLA fuses this tiny matvec for free).
    y = (h_out.reshape(S * B, H) @ jnp.asarray(params["fc_w"], jnp.float32).T
         + params["fc_b"])
    return y.reshape(S, B, -1).astype(x.dtype)


# ---------------------------- pure-JAX reference -------------------------------
def lstm_layer_ref(x, w_ih, w_hh, b_ih, b_hh):
    S, B, _ = x.shape
    H = w_hh.shape[1]

    def step(carry, x_t):
        h, c = carry
        gates = x_t @ w_ih.T + h @ w_hh.T + b_ih + b_hh
        i_g, f_g, g_g, o_g = jnp.split(gates, 4, axis=-1)
        i_g = jax.nn.sigmoid(i_g)
        f_g = jax.nn.sigmoid(f_g)
        g_g = jnp.tanh(g_g)
        o_g = jax.nn.sigmoid(o_g)
        c = f_g * c + i_g * g_g
        h = o_g * jnp.tanh(c)
        return (h, c), h

    init = (jnp.zeros((B, H), x.dtype), jnp.zeros((B, H), x.dtype))
    _, ys = jax.lax.scan(step, init, x)
    return ys


def lstm_model_ref(x, params):
    h = x
    for layer in params["lstm"]:
        h = lstm_layer_ref(h, layer["w_ih"], layer["w_hh"], layer["b_ih"], layer["b_hh"])
    S, B, H = h.shape
    y = h.reshape(S * B, H) @ params["fc_w"].T + params["fc_b"]
    return y.reshape(S, B, -1)


# ---------------------------------- main ---------------------------------------
if __name__ == "__main__":
    # Small shapes consistent with the module (original uses look_back=356).
    seq, batch = 8, 2
    input_dim = 32
    hidden_dim = 32
    num_layers = 3
    output_dim = 1

    key = jax.random.PRNGKey(0)
    k = 1.0 / jnp.sqrt(hidden_dim)

    def uni(key, shape):
        return jax.random.uniform(key, shape, jnp.float32, -k, k)

    keys = jax.random.split(key, 4 * num_layers + 3)
    lstm_params = []
    for layer in range(num_layers):
        in_dim = input_dim if layer == 0 else hidden_dim
        k0, k1, k2, k3 = keys[4 * layer:4 * layer + 4]
        lstm_params.append(dict(
            w_ih=uni(k0, (4 * hidden_dim, in_dim)),
            w_hh=uni(k1, (4 * hidden_dim, hidden_dim)),
            b_ih=uni(k2, (4 * hidden_dim,)),
            b_hh=uni(k3, (4 * hidden_dim,)),
        ))
    params = dict(
        lstm=lstm_params,
        fc_w=uni(keys[-3], (output_dim, hidden_dim)),
        fc_b=uni(keys[-2], (output_dim,)),
    )

    x = jax.random.normal(keys[-1], (seq, batch, input_dim), jnp.float32)

    y = lstm_model_forward(x, params)
    y = jax.block_until_ready(y)

    y_ref = lstm_model_ref(x, params)
    assert y.shape == (seq, batch, output_dim), y.shape
    assert jnp.allclose(y, y_ref, atol=1e-3, rtol=1e-3), (
        float(jnp.max(jnp.abs(y - y_ref))))

    print("KERNEL_OK")
</pallas_src>

<mosaic_0001>
module attributes {stable_mosaic.version = 11 : i64} {
  func.func @fused_lstm_kernel(%arg0: i32, %arg1: memref<4x64x32xf32, #tpu.memory_space<vmem>>, %arg2: memref<2x4x32x32xf32, #tpu.memory_space<vmem>>, %arg3: memref<3x4x32x32xf32, #tpu.memory_space<vmem>>, %arg4: memref<2x4x1x32xf32, #tpu.memory_space<vmem>>, %arg5: memref<64x32xf32, #tpu.memory_space<vmem>>, %arg6: memref<8x32xf32, #tpu.memory_space<vmem>>, %arg7: memref<8x32xf32, #tpu.memory_space<vmem>>, %arg8: memref<64x32xf32, #tpu.memory_space<vmem>>, %arg9: memref<4x64x32xf32, #tpu.memory_space<vmem>>) attributes {dimension_semantics = [#tpu.dimension_semantics<arbitrary>], iteration_bounds = array<i64: 1>, scalar_prefetch = 0 : i64, scratch_operands = 4 : i64, tpu.core_type = #tpu.core_type<tc>, window_params = [{pipeline_mode = #tpu.pipeline_mode<synchronous>, transform_indices = @transform_0, window_bounds = array<i64: 4, 64, 32>}, {pipeline_mode = #tpu.pipeline_mode<synchronous>, transform_indices = @transform_1, window_bounds = array<i64: 2, 4, 32, 32>}, {pipeline_mode = #tpu.pipeline_mode<synchronous>, transform_indices = @transform_2, window_bounds = array<i64: 3, 4, 32, 32>}, {pipeline_mode = #tpu.pipeline_mode<synchronous>, transform_indices = @transform_3, window_bounds = array<i64: 2, 4, 1, 32>}, {pipeline_mode = #tpu.pipeline_mode<synchronous>, transform_indices = @transform_4, window_bounds = array<i64: 64, 32>}]} {
    %cst = arith.constant 0.000000e+00 : f32
    %0 = vector.broadcast %cst : f32 to vector<8x32xf32>
    %c0 = arith.constant 0 : index
    %c0_0 = arith.constant 0 : index
    %1 = vector.load %arg6[%c0, %c0_0] : memref<8x32xf32, #tpu.memory_space<vmem>>, vector<8x32xf32>
    tpu.vector_store %arg6[%c0, %c0_0], %0 {strides = array<i32>} : memref<8x32xf32, #tpu.memory_space<vmem>>, vector<8x32xf32>,
    %cst_1 = arith.constant 0.000000e+00 : f32
    %2 = vector.broadcast %cst_1 : f32 to vector<8x32xf32>
    %c0_2 = arith.constant 0 : index
    %c0_3 = arith.constant 0 : index
    %3 = vector.load %arg7[%c0_2, %c0_3] : memref<8x32xf32, #tpu.memory_space<vmem>>, vector<8x32xf32>
    tpu.vector_store %arg7[%c0_2, %c0_3], %2 {strides = array<i32>} : memref<8x32xf32, #tpu.memory_space<vmem>>, vector<8x32xf32>,
    %c0_i32 = arith.constant 0 : i32
    %c8_i32 = arith.constant 8 : i32
    %4 = arith.addi %c0_i32, %c8_i32 : i32
    %c1_i32 = arith.constant 1 : i32
    scf.for %arg10 = %c0_i32 to %4 step %c1_i32  : i32 {
      %c8_i32_134 = arith.constant 8 : i32
      %103 = arith.muli %arg10, %c8_i32_134 : i32
      %104 = tpu.assume_multiple %103, 8 : i32
      %c0_135 = arith.constant 0 : index
      %c0_136 = arith.constant 0 : index
      %105 = vector.load %arg6[%c0_135, %c0_136] : memref<8x32xf32, #tpu.memory_space<vmem>>, vector<8x32xf32>
      %c0_137 = arith.constant 0 : index
      %106 = arith.index_cast %104 : i32 to index
      %c0_138 = arith.constant 0 : index
      %107 = vector.load %arg1[%c0_137, %106, %c0_138] : memref<4x64x32xf32, #tpu.memory_space<vmem>>, vector<1x8x32xf32>
      %108 = vector.shape_cast %107 : vector<1x8x32xf32> to vector<8x32xf32>
      %c0_139 = arith.constant 0 : index
      %c0_140 = arith.constant 0 : index
      %c0_141 = arith.constant 0 : index
      %c0_142 = arith.constant 0 : index
      %109 = vector.load %arg3[%c0_139, %c0_140, %c0_141, %c0_142] : memref<3x4x32x32xf32, #tpu.memory_space<vmem>>, vector<1x1x32x32xf32>
      %110 = vector.shape_cast %109 : vector<1x1x32x32xf32> to vector<32x32xf32>
      %cst_143 = arith.constant dense<0.000000e+00> : vector<8x32xf32>
      %111 = tpu.matmul %105, %110, %cst_143 {dimension_numbers = #tpu.dot_dimension_numbers<[1], [0], [0], [1], [0, 0, 1, 1], [], []>} : vector<8x32xf32>, vector<32x32xf32>, vector<8x32xf32> -> vector<8x32xf32>
      %112 = arith.addf %108, %111 : vector<8x32xf32>
      %113 = arith.negf %112 : vector<8x32xf32>
      %114 = math.exp %113 : vector<8x32xf32>
      %cst_144 = arith.constant 1.000000e+00 : f32
      %115 = vector.broadcast %cst_144 : f32 to vector<8x32xf32>
      %116 = arith.addf %115, %114 : vector<8x32xf32>
      %117 = arith.divf %115, %116 : vector<8x32xf32>
      %c1_145 = arith.constant 1 : index
      %118 = arith.index_cast %104 : i32 to index
      %c0_146 = arith.constant 0 : index
      %119 = vector.load %arg1[%c1_145, %118, %c0_146] : memref<4x64x32xf32, #tpu.memory_space<vmem>>, vector<1x8x32xf32>
      %120 = vector.shape_cast %119 : vector<1x8x32xf32> to vector<8x32xf32>
      %c0_147 = arith.constant 0 : index
      %c1_148 = arith.constant 1 : index
      %c0_149 = arith.constant 0 : index
      %c0_150 = arith.constant 0 : index
      %121 = vector.load %arg3[%c0_147, %c1_148, %c0_149, %c0_150] : memref<3x4x32x32xf32, #tpu.memory_space<vmem>>, vector<1x1x32x32xf32>
      %122 = vector.shape_cast %121 : vector<1x1x32x32xf32> to vector<32x32xf32>
      %cst_151 = arith.constant dense<0.000000e+00> : vector<8x32xf32>
      %123 = tpu.matmul %105, %122, %cst_151 {dimension_numbers = #tpu.dot_dimension_numbers<[1], [0], [0], [1], [0, 0, 1, 1], [], []>} : vector<8x32xf32>, vector<32x32xf32>, vector<8x32xf32> -> vector<8x32xf32>
      %124 = arith.addf %120, %123 : vector<8x32xf32>
      %125 = arith.negf %124 : vector<8x32xf32>
      %126 = math.exp %125 : vector<8x32xf32>
      %cst_152 = arith.constant 1.000000e+00 : f32
      %127 = vector.broadcast %cst_152 : f32 to vector<8x32xf32>
      %128 = arith.addf %127, %126 : vector<8x32xf32>
      %129 = arith.divf %127, %128 : vector<8x32xf32>
      %c2_153 = arith.constant 2 : index
      %130 = arith.index_cast %104 : i32 to index
      %c0_154 = arith.constant 0 : index
      %131 = vector.load %arg1[%c2_153, %130, %c0_154] : memref<4x64x32xf32, #tpu.memory_space<vmem>>, vector<1x8x32xf32>
      %132 = vector.shape_cast %131 : vector<1x8x32xf32> to vector<8x32xf32>
      %c0_155 = arith.constant 0 : index
      %c2_156 = arith.constant 2 : index
      %c0_157 = arith.constant 0 : index
      %c0_158 = arith.constant 0 : index
      %133 = vector.load %arg3[%c0_155, %c2_156, %c0_157, %c0_158] : memref<3x4x32x32xf32, #tpu.memory_space<vmem>>, vector<1x1x32x32xf32>
      %134 = vector.shape_cast %133 : vector<1x1x32x32xf32> to vector<32x32xf32>
      %cst_159 = arith.constant dense<0.000000e+00> : vector<8x32xf32>
      %135 = tpu.matmul %105, %134, %cst_159 {dimension_numbers = #tpu.dot_dimension_numbers<[1], [0], [0], [1], [0, 0, 1, 1], [], []>} : vector<8x32xf32>, vector<32x32xf32>, vector<8x32xf32> -> vector<8x32xf32>
      %136 = arith.addf %132, %135 : vector<8x32xf32>
      %137 = math.tanh %136 : vector<8x32xf32>
      %c3_160 = arith.constant 3 : index
      %138 = arith.index_cast %104 : i32 to index
      %c0_161 = arith.constant 0 : index
      %139 = vector.load %arg1[%c3_160, %138, %c0_161] : memref<4x64x32xf32, #tpu.memory_space<vmem>>, vector<1x8x32xf32>
      %140 = vector.shape_cast %139 : vector<1x8x32xf32> to vector<8x32xf32>
      %c0_162 = arith.constant 0 : index
      %c3_163 = arith.constant 3 : index
      %c0_164 = arith.constant 0 : index
      %c0_165 = arith.constant 0 : index
      %141 = vector.load %arg3[%c0_162, %c3_163, %c0_164, %c0_165] : memref<3x4x32x32xf32, #tpu.memory_space<vmem>>, vector<1x1x32x32xf32>
      %142 = vector.shape_cast %141 : vector<1x1x32x32xf32> to vector<32x32xf32>
      %cst_166 = arith.constant dense<0.000000e+00> : vector<8x32xf32>
      %143 = tpu.matmul %105, %142, %cst_166 {dimension_numbers = #tpu.dot_dimension_numbers<[1], [0], [0], [1], [0, 0, 1, 1], [], []>} : vector<8x32xf32>, vector<32x32xf32>, vector<8x32xf32> -> vector<8x32xf32>
      %144 = arith.addf %140, %143 : vector<8x32xf32>
      %145 = arith.negf %144 : vector<8x32xf32>
      %146 = math.exp %145 : vector<8x32xf32>
      %cst_167 = arith.constant 1.000000e+00 : f32
      %147 = vector.broadcast %cst_167 : f32 to vector<8x32xf32>
      %148 = arith.addf %147, %146 : vector<8x32xf32>
      %149 = arith.divf %147, %148 : vector<8x32xf32>
      %c0_168 = arith.constant 0 : index
      %c0_169 = arith.constant 0 : index
      %150 = vector.load %arg7[%c0_168, %c0_169] : memref<8x32xf32, #tpu.memory_space<vmem>>, vector<8x32xf32>
      %151 = arith.mulf %129, %150 : vector<8x32xf32>
      %152 = arith.mulf %117, %137 : vector<8x32xf32>
      %153 = arith.addf %151, %152 : vector<8x32xf32>
      %154 = math.tanh %153 : vector<8x32xf32>
      %155 = arith.mulf %149, %154 : vector<8x32xf32>
      %c0_170 = arith.constant 0 : index
      %c0_171 = arith.constant 0 : index
      %156 = vector.load %arg7[%c0_170, %c0_171] : memref<8x32xf32, #tpu.memory_space<vmem>>, vector<8x32xf32>
      tpu.vector_store %arg7[%c0_170, %c0_171], %153 {strides = array<i32>} : memref<8x32xf32, #tpu.memory_space<vmem>>, vector<8x32xf32>,
      %c0_172 = arith.constant 0 : index
      %c0_173 = arith.constant 0 : index
      %157 = vector.load %arg6[%c0_172, %c0_173] : memref<8x32xf32, #tpu.memory_space<vmem>>, vector<8x32xf32>
      tpu.vector_store %arg6[%c0_172, %c0_173], %155 {strides = array<i32>} : memref<8x32xf32, #tpu.memory_space<vmem>>, vector<8x32xf32>,
      %158 = arith.index_cast %104 : i32 to index
      %c0_174 = arith.constant 0 : index
      %159 = vector.load %arg8[%158, %c0_174] : memref<64x32xf32, #tpu.memory_space<vmem>>, vector<8x32xf32>
      tpu.vector_store %arg8[%158, %c0_174], %155 {strides = array<i32>} : memref<64x32xf32, #tpu.memory_space<vmem>>, vector<8x32xf32>,
    }
    %c8_i32_4 = arith.constant 8 : i32
    %c0_5 = arith.constant 0 : index
    %c0_6 = arith.constant 0 : index
    %5 = vector.load %arg8[%c0_5, %c0_6] : memref<64x32xf32, #tpu.memory_space<vmem>>, vector<64x32xf32>
    %c0_7 = arith.constant 0 : index
    %c0_8 = arith.constant 0 : index
    %c0_9 = arith.constant 0 : index
    %c0_10 = arith.constant 0 : index
    %6 = vector.load %arg2[%c0_7, %c0_8, %c0_9, %c0_10] : memref<2x4x32x32xf32, #tpu.memory_space<vmem>>, vector<1x1x32x32xf32>
    %7 = vector.shape_cast %6 : vector<1x1x32x32xf32> to vector<32x32xf32>
    %cst_11 = arith.constant dense<0.000000e+00> : vector<64x32xf32>
    %8 = tpu.matmul %5, %7, %cst_11 {dimension_numbers = #tpu.dot_dimension_numbers<[1], [0], [0], [1], [0, 0, 1, 1], [], []>} : vector<64x32xf32>, vector<32x32xf32>, vector<64x32xf32> -> vector<64x32xf32>
    %c0_12 = arith.constant 0 : index
    %c0_13 = arith.constant 0 : index
    %c0_14 = arith.constant 0 : index
    %c0_15 = arith.constant 0 : index
    %9 = vector.load %arg4[%c0_12, %c0_13, %c0_14, %c0_15] : memref<2x4x1x32xf32, #tpu.memory_space<vmem>>, vector<1x1x1x32xf32>
    %10 = vector.shape_cast %9 : vector<1x1x1x32xf32> to vector<1x32xf32>
    %11 = vector.broadcast %10 : vector<1x32xf32> to vector<64x32xf32>
    %12 = arith.addf %8, %11 : vector<64x32xf32>
    %c0_16 = arith.constant 0 : index
    %c0_17 = arith.constant 0 : index
    %c0_18 = arith.constant 0 : index
    %13 = vector.load %arg9[%c0_16, %c0_17, %c0_18] : memref<4x64x32xf32, #tpu.memory_space<vmem>>, vector<1x64x32xf32>
    %14 = vector.shape_cast %13 : vector<1x64x32xf32> to vector<64x32xf32>
    %15 = vector.shape_cast %12 : vector<64x32xf32> to vector<1x64x32xf32>
    tpu.vector_store %arg9[%c0_16, %c0_17, %c0_18], %15 {strides = array<i32>} : memref<4x64x32xf32, #tpu.memory_space<vmem>>, vector<1x64x32xf32>,
    %c0_19 = arith.constant 0 : index
    %c0_20 = arith.constant 0 : index
    %16 = vector.load %arg8[%c0_19, %c0_20] : memref<64x32xf32, #tpu.memory_space<vmem>>, vector<64x32xf32>
    %c0_21 = arith.constant 0 : index
    %c1 = arith.constant 1 : index
    %c0_22 = arith.constant 0 : index
    %c0_23 = arith.constant 0 : index
    %17 = vector.load %arg2[%c0_21, %c1, %c0_22, %c0_23] : memref<2x4x32x32xf32, #tpu.memory_space<vmem>>, vector<1x1x32x32xf32>
    %18 = vector.shape_cast %17 : vector<1x1x32x32xf32> to vector<32x32xf32>
    %cst_24 = arith.constant dense<0.000000e+00> : vector<64x32xf32>
    %19 = tpu.matmul %16, %18, %cst_24 {dimension_numbers = #tpu.dot_dimension_numbers<[1], [0], [0], [1], [0, 0, 1, 1], [], []>} : vector<64x32xf32>, vector<32x32xf32>, vector<64x32xf32> -> vector<64x32xf32>
    %c0_25 = arith.constant 0 : index
    %c1_26 = arith.constant 1 : index
    %c0_27 = arith.constant 0 : index
    %c0_28 = arith.constant 0 : index
    %20 = vector.load %arg4[%c0_25, %c1_26, %c0_27, %c0_28] : memref<2x4x1x32xf32, #tpu.memory_space<vmem>>, vector<1x1x1x32xf32>
    %21 = vector.shape_cast %20 : vector<1x1x1x32xf32> to vector<1x32xf32>
    %22 = vector.broadcast %21 : vector<1x32xf32> to vector<64x32xf32>
    %23 = arith.addf %19, %22 : vector<64x32xf32>
    %c1_29 = arith.constant 1 : index
    %c0_30 = arith.constant 0 : index
    %c0_31 = arith.constant 0 : index
    %24 = vector.load %arg9[%c1_29, %c0_30, %c0_31] : memref<4x64x32xf32, #tpu.memory_space<vmem>>, vector<1x64x32xf32>
    %25 = vector.shape_cast %24 : vector<1x64x32xf32> to vector<64x32xf32>
    %26 = vector.shape_cast %23 : vector<64x32xf32> to vector<1x64x32xf32>
    tpu.vector_store %arg9[%c1_29, %c0_30, %c0_31], %26 {strides = array<i32>} : memref<4x64x32xf32, #tpu.memory_space<vmem>>, vector<1x64x32xf32>,
    %c0_32 = arith.constant 0 : index
    %c0_33 = arith.constant 0 : index
    %27 = vector.load %arg8[%c0_32, %c0_33] : memref<64x32xf32, #tpu.memory_space<vmem>>, vector<64x32xf32>
    %c0_34 = arith.constant 0 : index
    %c2 = arith.constant 2 : index
    %c0_35 = arith.constant 0 : index
    %c0_36 = arith.constant 0 : index
    %28 = vector.load %arg2[%c0_34, %c2, %c0_35, %c0_36] : memref<2x4x32x32xf32, #tpu.memory_space<vmem>>, vector<1x1x32x32xf32>
    %29 = vector.shape_cast %28 : vector<1x1x32x32xf32> to vector<32x32xf32>
    %cst_37 = arith.constant dense<0.000000e+00> : vector<64x32xf32>
    %30 = tpu.matmul %27, %29, %cst_37 {dimension_numbers = #tpu.dot_dimension_numbers<[1], [0], [0], [1], [0, 0, 1, 1], [], []>} : vector<64x32xf32>, vector<32x32xf32>, vector<64x32xf32> -> vector<64x32xf32>
    %c0_38 = arith.constant 0 : index
    %c2_39 = arith.constant 2 : index
    %c0_40 = arith.constant 0 : index
    %c0_41 = arith.constant 0 : index
    %31 = vector.load %arg4[%c0_38, %c2_39, %c0_40, %c0_41] : memref<2x4x1x32xf32, #tpu.memory_space<vmem>>, vector<1x1x1x32xf32>
    %32 = vector.shape_cast %31 : vector<1x1x1x32xf32> to vector<1x32xf32>
    %33 = vector.broadcast %32 : vector<1x32xf32> to vector<64x32xf32>
    %34 = arith.addf %30, %33 : vector<64x32xf32>
    %c2_42 = arith.constant 2 : index
    %c0_43 = arith.constant 0 : index
    %c0_44 = arith.constant 0 : index
    %35 = vector.load %arg9[%c2_42, %c0_43, %c0_44] : memref<4x64x32xf32, #tpu.memory_space<vmem>>, vector<1x64x32xf32>
    %36 = vector.shape_cast %35 : vector<1x64x32xf32> to vector<64x32xf32>
    %37 = vector.shape_cast %34 : vector<64x32xf32> to vector<1x64x32xf32>
    tpu.vector_store %arg9[%c2_42, %c0_43, %c0_44], %37 {strides = array<i32>} : memref<4x64x32xf32, #tpu.memory_space<vmem>>, vector<1x64x32xf32>,
    %c0_45 = arith.constant 0 : index
    %c0_46 = arith.constant 0 : index
    %38 = vector.load %arg8[%c0_45, %c0_46] : memref<64x32xf32, #tpu.memory_space<vmem>>, vector<64x32xf32>
    %c0_47 = arith.constant 0 : index
    %c3 = arith.constant 3 : index
    %c0_48 = arith.constant 0 : index
    %c0_49 = arith.constant 0 : index
    %39 = vector.load %arg2[%c0_47, %c3, %c0_48, %c0_49] : memref<2x4x32x32xf32, #tpu.memory_space<vmem>>, vector<1x1x32x32xf32>
    %40 = vector.shape_cast %39 : vector<1x1x32x32xf32> to vector<32x32xf32>
    %cst_50 = arith.constant dense<0.000000e+00> : vector<64x32xf32>
    %41 = tpu.matmul %38, %40, %cst_50 {dimension_numbers = #tpu.dot_dimension_numbers<[1], [0], [0], [1], [0, 0, 1, 1], [], []>} : vector<64x32xf32>, vector<32x32xf32>, vector<64x32xf32> -> vector<64x32xf32>
    %c0_51 = arith.constant 0 : index
    %c3_52 = arith.constant 3 : index
    %c0_53 = arith.constant 0 : index
    %c0_54 = arith.constant 0 : index
    %42 = vector.load %arg4[%c0_51, %c3_52, %c0_53, %c0_54] : memref<2x4x1x32xf32, #tpu.memory_space<vmem>>, vector<1x1x1x32xf32>
    %43 = vector.shape_cast %42 : vector<1x1x1x32xf32> to vector<1x32xf32>
    %44 = vector.broadcast %43 : vector<1x32xf32> to vector<64x32xf32>
    %45 = arith.addf %41, %44 : vector<64x32xf32>
    %c3_55 = arith.constant 3 : index
    %c0_56 = arith.constant 0 : index
    %c0_57 = arith.constant 0 : index
    %46 = vector.load %arg9[%c3_55, %c0_56, %c0_57] : memref<4x64x32xf32, #tpu.memory_space<vmem>>, vector<1x64x32xf32>
    %47 = vector.shape_cast %46 : vector<1x64x32xf32> to vector<64x32xf32>
    %48 = vector.shape_cast %45 : vector<64x32xf32> to vector<1x64x32xf32>
    tpu.vector_store %arg9[%c3_55, %c0_56, %c0_57], %48 {strides = array<i32>} : memref<4x64x32xf32, #tpu.memory_space<vmem>>, vector<1x64x32xf32>,
    %cst_58 = arith.constant 0.000000e+00 : f32
    %49 = vector.broadcast %cst_58 : f32 to vector<8x32xf32>
    %c0_59 = arith.constant 0 : index
    %c0_60 = arith.constant 0 : index
    %50 = vector.load %arg6[%c0_59, %c0_60] : memref<8x32xf32, #tpu.memory_space<vmem>>, vector<8x32xf32>
    tpu.vector_store %arg6[%c0_59, %c0_60], %49 {strides = array<i32>} : memref<8x32xf32, #tpu.memory_space<vmem>>, vector<8x32xf32>,
    %cst_61 = arith.constant 0.000000e+00 : f32
    %51 = vector.broadcast %cst_61 : f32 to vector<8x32xf32>
    %c0_62 = arith.constant 0 : index
    %c0_63 = arith.constant 0 : index
    %52 = vector.load %arg7[%c0_62, %c0_63] : memref<8x32xf32, #tpu.memory_space<vmem>>, vector<8x32xf32>
    tpu.vector_store %arg7[%c0_62, %c0_63], %51 {strides = array<i32>} : memref<8x32xf32, #tpu.memory_space<vmem>>, vector<8x32xf32>,
    %c0_i32_64 = arith.constant 0 : i32
    %c8_i32_65 = arith.constant 8 : i32
    %53 = arith.addi %c0_i32_64, %c8_i32_65 : i32
    %c1_i32_66 = arith.constant 1 : i32
    scf.for %arg10 = %c0_i32_64 to %53 step %c1_i32_66  : i32 {
      %c8_i32_134 = arith.constant 8 : i32
      %103 = arith.muli %arg10, %c8_i32_134 : i32
      %104 = tpu.assume_multiple %103, 8 : i32
      %c0_135 = arith.constant 0 : index
      %c0_136 = arith.constant 0 : index
      %105 = vector.load %arg6[%c0_135, %c0_136] : memref<8x32xf32, #tpu.memory_space<vmem>>, vector<8x32xf32>
      %c0_137 = arith.constant 0 : index
      %106 = arith.index_cast %104 : i32 to index
      %c0_138 = arith.constant 0 : index
      %107 = vector.load %arg9[%c0_137, %106, %c0_138] : memref<4x64x32xf32, #tpu.memory_space<vmem>>, vector<1x8x32xf32>
      %108 = vector.shape_cast %107 : vector<1x8x32xf32> to vector<8x32xf32>
      %c1_139 = arith.constant 1 : index
      %c0_140 = arith.constant 0 : index
      %c0_141 = arith.constant 0 : index
      %c0_142 = arith.constant 0 : index
      %109 = vector.load %arg3[%c1_139, %c0_140, %c0_141, %c0_142] : memref<3x4x32x32xf32, #tpu.memory_space<vmem>>, vector<1x1x32x32xf32>
      %110 = vector.shape_cast %109 : vector<1x1x32x32xf32> to vector<32x32xf32>
      %cst_143 = arith.constant dense<0.000000e+00> : vector<8x32xf32>
      %111 = tpu.matmul %105, %110, %cst_143 {dimension_numbers = #tpu.dot_dimension_numbers<[1], [0], [0], [1], [0, 0, 1, 1], [], []>} : vector<8x32xf32>, vector<32x32xf32>, vector<8x32xf32> -> vector<8x32xf32>
      %112 = arith.addf %108, %111 : vector<8x32xf32>
      %113 = arith.negf %112 : vector<8x32xf32>
      %114 = math.exp %113 : vector<8x32xf32>
      %cst_144 = arith.constant 1.000000e+00 : f32
      %115 = vector.broadcast %cst_144 : f32 to vector<8x32xf32>
      %116 = arith.addf %115, %114 : vector<8x32xf32>
      %117 = arith.divf %115, %116 : vector<8x32xf32>
      %c1_145 = arith.constant 1 : index
      %118 = arith.index_cast %104 : i32 to index
      %c0_146 = arith.constant 0 : index
      %119 = vector.load %arg9[%c1_145, %118, %c0_146] : memref<4x64x32xf32, #tpu.memory_space<vmem>>, vector<1x8x32xf32>
      %120 = vector.shape_cast %119 : vector<1x8x32xf32> to vector<8x32xf32>
      %c1_147 = arith.constant 1 : index
      %c1_148 = arith.constant 1 : index
      %c0_149 = arith.constant 0 : index
      %c0_150 = arith.constant 0 : index
      %121 = vector.load %arg3[%c1_147, %c1_148, %c0_149, %c0_150] : memref<3x4x32x32xf32, #tpu.memory_space<vmem>>, vector<1x1x32x32xf32>
      %122 = vector.shape_cast %121 : vector<1x1x32x32xf32> to vector<32x32xf32>
      %cst_151 = arith.constant dense<0.000000e+00> : vector<8x32xf32>
      %123 = tpu.matmul %105, %122, %cst_151 {dimension_numbers = #tpu.dot_dimension_numbers<[1], [0], [0], [1], [0, 0, 1, 1], [], []>} : vector<8x32xf32>, vector<32x32xf32>, vector<8x32xf32> -> vector<8x32xf32>
      %124 = arith.addf %120, %123 : vector<8x32xf32>
      %125 = arith.negf %124 : vector<8x32xf32>
      %126 = math.exp %125 : vector<8x32xf32>
      %cst_152 = arith.constant 1.000000e+00 : f32
      %127 = vector.broadcast %cst_152 : f32 to vector<8x32xf32>
      %128 = arith.addf %127, %126 : vector<8x32xf32>
      %129 = arith.divf %127, %128 : vector<8x32xf32>
      %c2_153 = arith.constant 2 : index
      %130 = arith.index_cast %104 : i32 to index
      %c0_154 = arith.constant 0 : index
      %131 = vector.load %arg9[%c2_153, %130, %c0_154] : memref<4x64x32xf32, #tpu.memory_space<vmem>>, vector<1x8x32xf32>
      %132 = vector.shape_cast %131 : vector<1x8x32xf32> to vector<8x32xf32>
      %c1_155 = arith.constant 1 : index
      %c2_156 = arith.constant 2 : index
      %c0_157 = arith.constant 0 : index
      %c0_158 = arith.constant 0 : index
      %133 = vector.load %arg3[%c1_155, %c2_156, %c0_157, %c0_158] : memref<3x4x32x32xf32, #tpu.memory_space<vmem>>, vector<1x1x32x32xf32>
      %134 = vector.shape_cast %133 : vector<1x1x32x32xf32> to vector<32x32xf32>
      %cst_159 = arith.constant dense<0.000000e+00> : vector<8x32xf32>
      %135 = tpu.matmul %105, %134, %cst_159 {dimension_numbers = #tpu.dot_dimension_numbers<[1], [0], [0], [1], [0, 0, 1, 1], [], []>} : vector<8x32xf32>, vector<32x32xf32>, vector<8x32xf32> -> vector<8x32xf32>
      %136 = arith.addf %132, %135 : vector<8x32xf32>
      %137 = math.tanh %136 : vector<8x32xf32>
      %c3_160 = arith.constant 3 : index
      %138 = arith.index_cast %104 : i32 to index
      %c0_161 = arith.constant 0 : index
      %139 = vector.load %arg9[%c3_160, %138, %c0_161] : memref<4x64x32xf32, #tpu.memory_space<vmem>>, vector<1x8x32xf32>
      %140 = vector.shape_cast %139 : vector<1x8x32xf32> to vector<8x32xf32>
      %c1_162 = arith.constant 1 : index
      %c3_163 = arith.constant 3 : index
      %c0_164 = arith.constant 0 : index
      %c0_165 = arith.constant 0 : index
      %141 = vector.load %arg3[%c1_162, %c3_163, %c0_164, %c0_165] : memref<3x4x32x32xf32, #tpu.memory_space<vmem>>, vector<1x1x32x32xf32>
      %142 = vector.shape_cast %141 : vector<1x1x32x32xf32> to vector<32x32xf32>
      %cst_166 = arith.constant dense<0.000000e+00> : vector<8x32xf32>
      %143 = tpu.matmul %105, %142, %cst_166 {dimension_numbers = #tpu.dot_dimension_numbers<[1], [0], [0], [1], [0, 0, 1, 1], [], []>} : vector<8x32xf32>, vector<32x32xf32>, vector<8x32xf32> -> vector<8x32xf32>
      %144 = arith.addf %140, %143 : vector<8x32xf32>
      %145 = arith.negf %144 : vector<8x32xf32>
      %146 = math.exp %145 : vector<8x32xf32>
      %cst_167 = arith.constant 1.000000e+00 : f32
      %147 = vector.broadcast %cst_167 : f32 to vector<8x32xf32>
      %148 = arith.addf %147, %146 : vector<8x32xf32>
      %149 = arith.divf %147, %148 : vector<8x32xf32>
      %c0_168 = arith.constant 0 : index
      %c0_169 = arith.constant 0 : index
      %150 = vector.load %arg7[%c0_168, %c0_169] : memref<8x32xf32, #tpu.memory_space<vmem>>, vector<8x32xf32>
      %151 = arith.mulf %129, %150 : vector<8x32xf32>
      %152 = arith.mulf %117, %137 : vector<8x32xf32>
      %153 = arith.addf %151, %152 : vector<8x32xf32>
      %154 = math.tanh %153 : vector<8x32xf32>
      %155 = arith.mulf %149, %154 : vector<8x32xf32>
      %c0_170 = arith.constant 0 : index
      %c0_171 = arith.constant 0 : index
      %156 = vector.load %arg7[%c0_170, %c0_171] : memref<8x32xf32, #tpu.memory_space<vmem>>, vector<8x32xf32>
      tpu.vector_store %arg7[%c0_170, %c0_171], %153 {strides = array<i32>} : memref<8x32xf32, #tpu.memory_space<vmem>>, vector<8x32xf32>,
      %c0_172 = arith.constant 0 : index
      %c0_173 = arith.constant 0 : index
      %157 = vector.load %arg6[%c0_172, %c0_173] : memref<8x32xf32, #tpu.memory_space<vmem>>, vector<8x32xf32>
      tpu.vector_store %arg6[%c0_172, %c0_173], %155 {strides = array<i32>} : memref<8x32xf32, #tpu.memory_space<vmem>>, vector<8x32xf32>,
      %158 = arith.index_cast %104 : i32 to index
      %c0_174 = arith.constant 0 : index
      %159 = vector.load %arg8[%158, %c0_174] : memref<64x32xf32, #tpu.memory_space<vmem>>, vector<8x32xf32>
      tpu.vector_store %arg8[%158, %c0_174], %155 {strides = array<i32>} : memref<64x32xf32, #tpu.memory_space<vmem>>, vector<8x32xf32>,
    }
    %c8_i32_67 = arith.constant 8 : i32
    %c0_68 = arith.constant 0 : index
    %c0_69 = arith.constant 0 : index
    %54 = vector.load %arg8[%c0_68, %c0_69] : memref<64x32xf32, #tpu.memory_space<vmem>>, vector<64x32xf32>
    %c1_70 = arith.constant 1 : index
    %c0_71 = arith.constant 0 : index
    %c0_72 = arith.constant 0 : index
    %c0_73 = arith.constant 0 : index
    %55 = vector.load %arg2[%c1_70, %c0_71, %c0_72, %c0_73] : memref<2x4x32x32xf32, #tpu.memory_space<vmem>>, vector<1x1x32x32xf32>
    %56 = vector.shape_cast %55 : vector<1x1x32x32xf32> to vector<32x32xf32>
    %cst_74 = arith.constant dense<0.000000e+00> : vector<64x32xf32>
    %57 = tpu.matmul %54, %56, %cst_74 {dimension_numbers = #tpu.dot_dimension_numbers<[1], [0], [0], [1], [0, 0, 1, 1], [], []>} : vector<64x32xf32>, vector<32x32xf32>, vector<64x32xf32> -> vector<64x32xf32>
    %c1_75 = arith.constant 1 : index
    %c0_76 = arith.constant 0 : index
    %c0_77 = arith.constant 0 : index
    %c0_78 = arith.constant 0 : index
    %58 = vector.load %arg4[%c1_75, %c0_76, %c0_77, %c0_78] : memref<2x4x1x32xf32, #tpu.memory_space<vmem>>, vector<1x1x1x32xf32>
    %59 = vector.shape_cast %58 : vector<1x1x1x32xf32> to vector<1x32xf32>
    %60 = vector.broadcast %59 : vector<1x32xf32> to vector<64x32xf32>
    %61 = arith.addf %57, %60 : vector<64x32xf32>
    %c0_79 = arith.constant 0 : index
    %c0_80 = arith.constant 0 : index
    %c0_81 = arith.constant 0 : index
    %62 = vector.load %arg9[%c0_79, %c0_80, %c0_81] : memref<4x64x32xf32, #tpu.memory_space<vmem>>, vector<1x64x32xf32>
    %63 = vector.shape_cast %62 : vector<1x64x32xf32> to vector<64x32xf32>
    %64 = vector.shape_cast %61 : vector<64x32xf32> to vector<1x64x32xf32>
    tpu.vector_store %arg9[%c0_79, %c0_80, %c0_81], %64 {strides = array<i32>} : memref<4x64x32xf32, #tpu.memory_space<vmem>>, vector<1x64x32xf32>,
    %c0_82 = arith.constant 0 : index
    %c0_83 = arith.constant 0 : index
    %65 = vector.load %arg8[%c0_82, %c0_83] : memref<64x32xf32, #tpu.memory_space<vmem>>, vector<64x32xf32>
    %c1_84 = arith.constant 1 : index
    %c1_85 = arith.constant 1 : index
    %c0_86 = arith.constant 0 : index
    %c0_87 = arith.constant 0 : index
    %66 = vector.load %arg2[%c1_84, %c1_85, %c0_86, %c0_87] : memref<2x4x32x32xf32, #tpu.memory_space<vmem>>, vector<1x1x32x32xf32>
    %67 = vector.shape_cast %66 : vector<1x1x32x32xf32> to vector<32x32xf32>
    %cst_88 = arith.constant dense<0.000000e+00> : vector<64x32xf32>
    %68 = tpu.matmul %65, %67, %cst_88 {dimension_numbers = #tpu.dot_dimension_numbers<[1], [0], [0], [1], [0, 0, 1, 1], [], []>} : vector<64x32xf32>, vector<32x32xf32>, vector<64x32xf32> -> vector<64x32xf32>
    %c1_89 = arith.constant 1 : index
    %c1_90 = arith.constant 1 : index
    %c0_91 = arith.constant 0 : index
    %c0_92 = arith.constant 0 : index
    %69 = vector.load %arg4[%c1_89, %c1_90, %c0_91, %c0_92] : memref<2x4x1x32xf32, #tpu.memory_space<vmem>>, vector<1x1x1x32xf32>
    %70 = vector.shape_cast %69 : vector<1x1x1x32xf32> to vector<1x32xf32>
    %71 = vector.broadcast %70 : vector<1x32xf32> to vector<64x32xf32>
    %72 = arith.addf %68, %71 : vector<64x32xf32>
    %c1_93 = arith.constant 1 : index
    %c0_94 = arith.constant 0 : index
    %c0_95 = arith.constant 0 : index
    %73 = vector.load %arg9[%c1_93, %c0_94, %c0_95] : memref<4x64x32xf32, #tpu.memory_space<vmem>>, vector<1x64x32xf32>
    %74 = vector.shape_cast %73 : vector<1x64x32xf32> to vector<64x32xf32>
    %75 = vector.shape_cast %72 : vector<64x32xf32> to vector<1x64x32xf32>
    tpu.vector_store %arg9[%c1_93, %c0_94, %c0_95], %75 {strides = array<i32>} : memref<4x64x32xf32, #tpu.memory_space<vmem>>, vector<1x64x32xf32>,
    %c0_96 = arith.constant 0 : index
    %c0_97 = arith.constant 0 : index
    %76 = vector.load %arg8[%c0_96, %c0_97] : memref<64x32xf32, #tpu.memory_space<vmem>>, vector<64x32xf32>
    %c1_98 = arith.constant 1 : index
    %c2_99 = arith.constant 2 : index
    %c0_100 = arith.constant 0 : index
    %c0_101 = arith.constant 0 : index
    %77 = vector.load %arg2[%c1_98, %c2_99, %c0_100, %c0_101] : memref<2x4x32x32xf32, #tpu.memory_space<vmem>>, vector<1x1x32x32xf32>
    %78 = vector.shape_cast %77 : vector<1x1x32x32xf32> to vector<32x32xf32>
    %cst_102 = arith.constant dense<0.000000e+00> : vector<64x32xf32>
    %79 = tpu.matmul %76, %78, %cst_102 {dimension_numbers = #tpu.dot_dimension_numbers<[1], [0], [0], [1], [0, 0, 1, 1], [], []>} : vector<64x32xf32>, vector<32x32xf32>, vector<64x32xf32> -> vector<64x32xf32>
    %c1_103 = arith.constant 1 : index
    %c2_104 = arith.constant 2 : index
    %c0_105 = arith.constant 0 : index
    %c0_106 = arith.constant 0 : index
    %80 = vector.load %arg4[%c1_103, %c2_104, %c0_105, %c0_106] : memref<2x4x1x32xf32, #tpu.memory_space<vmem>>, vector<1x1x1x32xf32>
    %81 = vector.shape_cast %80 : vector<1x1x1x32xf32> to vector<1x32xf32>
    %82 = vector.broadcast %81 : vector<1x32xf32> to vector<64x32xf32>
    %83 = arith.addf %79, %82 : vector<64x32xf32>
    %c2_107 = arith.constant 2 : index
    %c0_108 = arith.constant 0 : index
    %c0_109 = arith.constant 0 : index
    %84 = vector.load %arg9[%c2_107, %c0_108, %c0_109] : memref<4x64x32xf32, #tpu.memory_space<vmem>>, vector<1x64x32xf32>
    %85 = vector.shape_cast %84 : vector<1x64x32xf32> to vector<64x32xf32>
    %86 = vector.shape_cast %83 : vector<64x32xf32> to vector<1x64x32xf32>
    tpu.vector_store %arg9[%c2_107, %c0_108, %c0_109], %86 {strides = array<i32>} : memref<4x64x32xf32, #tpu.memory_space<vmem>>, vector<1x64x32xf32>,
    %c0_110 = arith.constant 0 : index
    %c0_111 = arith.constant 0 : index
    %87 = vector.load %arg8[%c0_110, %c0_111] : memref<64x32xf32, #tpu.memory_space<vmem>>, vector<64x32xf32>
    %c1_112 = arith.constant 1 : index
    %c3_113 = arith.constant 3 : index
    %c0_114 = arith.constant 0 : index
    %c0_115 = arith.constant 0 : index
    %88 = vector.load %arg2[%c1_112, %c3_113, %c0_114, %c0_115] : memref<2x4x32x32xf32, #tpu.memory_space<vmem>>, vector<1x1x32x32xf32>
    %89 = vector.shape_cast %88 : vector<1x1x32x32xf32> to vector<32x32xf32>
    %cst_116 = arith.constant dense<0.000000e+00> : vector<64x32xf32>
    %90 = tpu.matmul %87, %89, %cst_116 {dimension_numbers = #tpu.dot_dimension_numbers<[1], [0], [0], [1], [0, 0, 1, 1], [], []>} : vector<64x32xf32>, vector<32x32xf32>, vector<64x32xf32> -> vector<64x32xf32>
    %c1_117 = arith.constant 1 : index
    %c3_118 = arith.constant 3 : index
    %c0_119 = arith.constant 0 : index
    %c0_120 = arith.constant 0 : index
    %91 = vector.load %arg4[%c1_117, %c3_118, %c0_119, %c0_120] : memref<2x4x1x32xf32, #tpu.memory_space<vmem>>, vector<1x1x1x32xf32>
    %92 = vector.shape_cast %91 : vector<1x1x1x32xf32> to vector<1x32xf32>
    %93 = vector.broadcast %92 : vector<1x32xf32> to vector<64x32xf32>
    %94 = arith.addf %90, %93 : vector<64x32xf32>
    %c3_121 = arith.constant 3 : index
    %c0_122 = arith.constant 0 : index
    %c0_123 = arith.constant 0 : index
    %95 = vector.load %arg9[%c3_121, %c0_122, %c0_123] : memref<4x64x32xf32, #tpu.memory_space<vmem>>, vector<1x64x32xf32>
    %96 = vector.shape_cast %95 : vector<1x64x32xf32> to vector<64x32xf32>
    %97 = vector.shape_cast %94 : vector<64x32xf32> to vector<1x64x32xf32>
    tpu.vector_store %arg9[%c3_121, %c0_122, %c0_123], %97 {strides = array<i32>} : memref<4x64x32xf32, #tpu.memory_space<vmem>>, vector<1x64x32xf32>,
    %cst_124 = arith.constant 0.000000e+00 : f32
    %98 = vector.broadcast %cst_124 : f32 to vector<8x32xf32>
    %c0_125 = arith.constant 0 : index
    %c0_126 = arith.constant 0 : index
    %99 = vector.load %arg6[%c0_125, %c0_126] : memref<8x32xf32, #tpu.memory_space<vmem>>, vector<8x32xf32>
    tpu.vector_store %arg6[%c0_125, %c0_126], %98 {strides = array<i32>} : memref<8x32xf32, #tpu.memory_space<vmem>>, vector<8x32xf32>,
    %cst_127 = arith.constant 0.000000e+00 : f32
    %100 = vector.broadcast %cst_127 : f32 to vector<8x32xf32>
    %c0_128 = arith.constant 0 : index
    %c0_129 = arith.constant 0 : index
    %101 = vector.load %arg7[%c0_128, %c0_129] : memref<8x32xf32, #tpu.memory_space<vmem>>, vector<8x32xf32>
    tpu.vector_store %arg7[%c0_128, %c0_129], %100 {strides = array<i32>} : memref<8x32xf32, #tpu.memory_space<vmem>>, vector<8x32xf32>,
    %c0_i32_130 = arith.constant 0 : i32
    %c8_i32_131 = arith.constant 8 : i32
    %102 = arith.addi %c0_i32_130, %c8_i32_131 : i32
    %c1_i32_132 = arith.constant 1 : i32
    scf.for %arg10 = %c0_i32_130 to %102 step %c1_i32_132  : i32 {
      %c8_i32_134 = arith.constant 8 : i32
      %103 = arith.muli %arg10, %c8_i32_134 : i32
      %104 = tpu.assume_multiple %103, 8 : i32
      %c0_135 = arith.constant 0 : index
      %c0_136 = arith.constant 0 : index
      %105 = vector.load %arg6[%c0_135, %c0_136] : memref<8x32xf32, #tpu.memory_space<vmem>>, vector<8x32xf32>
      %c0_137 = arith.constant 0 : index
      %106 = arith.index_cast %104 : i32 to index
      %c0_138 = arith.constant 0 : index
      %107 = vector.load %arg9[%c0_137, %106, %c0_138] : memref<4x64x32xf32, #tpu.memory_space<vmem>>, vector<1x8x32xf32>
      %108 = vector.shape_cast %107 : vector<1x8x32xf32> to vector<8x32xf32>
      %c2_139 = arith.constant 2 : index
      %c0_140 = arith.constant 0 : index
      %c0_141 = arith.constant 0 : index
      %c0_142 = arith.constant 0 : index
      %109 = vector.load %arg3[%c2_139, %c0_140, %c0_141, %c0_142] : memref<3x4x32x32xf32, #tpu.memory_space<vmem>>, vector<1x1x32x32xf32>
      %110 = vector.shape_cast %109 : vector<1x1x32x32xf32> to vector<32x32xf32>
      %cst_143 = arith.constant dense<0.000000e+00> : vector<8x32xf32>
      %111 = tpu.matmul %105, %110, %cst_143 {dimension_numbers = #tpu.dot_dimension_numbers<[1], [0], [0], [1], [0, 0, 1, 1], [], []>} : vector<8x32xf32>, vector<32x32xf32>, vector<8x32xf32> -> vector<8x32xf32>
      %112 = arith.addf %108, %111 : vector<8x32xf32>
      %113 = arith.negf %112 : vector<8x32xf32>
      %114 = math.exp %113 : vector<8x32xf32>
      %cst_144 = arith.constant 1.000000e+00 : f32
      %115 = vector.broadcast %cst_144 : f32 to vector<8x32xf32>
      %116 = arith.addf %115, %114 : vector<8x32xf32>
      %117 = arith.divf %115, %116 : vector<8x32xf32>
      %c1_145 = arith.constant 1 : index
      %118 = arith.index_cast %104 : i32 to index
      %c0_146 = arith.constant 0 : index
      %119 = vector.load %arg9[%c1_145, %118, %c0_146] : memref<4x64x32xf32, #tpu.memory_space<vmem>>, vector<1x8x32xf32>
      %120 = vector.shape_cast %119 : vector<1x8x32xf32> to vector<8x32xf32>
      %c2_147 = arith.constant 2 : index
      %c1_148 = arith.constant 1 : index
      %c0_149 = arith.constant 0 : index
      %c0_150 = arith.constant 0 : index
      %121 = vector.load %arg3[%c2_147, %c1_148, %c0_149, %c0_150] : memref<3x4x32x32xf32, #tpu.memory_space<vmem>>, vector<1x1x32x32xf32>
      %122 = vector.shape_cast %121 : vector<1x1x32x32xf32> to vector<32x32xf32>
      %cst_151 = arith.constant dense<0.000000e+00> : vector<8x32xf32>
      %123 = tpu.matmul %105, %122, %cst_151 {dimension_numbers = #tpu.dot_dimension_numbers<[1], [0], [0], [1], [0, 0, 1, 1], [], []>} : vector<8x32xf32>, vector<32x32xf32>, vector<8x32xf32> -> vector<8x32xf32>
      %124 = arith.addf %120, %123 : vector<8x32xf32>
      %125 = arith.negf %124 : vector<8x32xf32>
      %126 = math.exp %125 : vector<8x32xf32>
      %cst_152 = arith.constant 1.000000e+00 : f32
      %127 = vector.broadcast %cst_152 : f32 to vector<8x32xf32>
      %128 = arith.addf %127, %126 : vector<8x32xf32>
      %129 = arith.divf %127, %128 : vector<8x32xf32>
      %c2_153 = arith.constant 2 : index
      %130 = arith.index_cast %104 : i32 to index
      %c0_154 = arith.constant 0 : index
      %131 = vector.load %arg9[%c2_153, %130, %c0_154] : memref<4x64x32xf32, #tpu.memory_space<vmem>>, vector<1x8x32xf32>
      %132 = vector.shape_cast %131 : vector<1x8x32xf32> to vector<8x32xf32>
      %c2_155 = arith.constant 2 : index
      %c2_156 = arith.constant 2 : index
      %c0_157 = arith.constant 0 : index
      %c0_158 = arith.constant 0 : index
      %133 = vector.load %arg3[%c2_155, %c2_156, %c0_157, %c0_158] : memref<3x4x32x32xf32, #tpu.memory_space<vmem>>, vector<1x1x32x32xf32>
      %134 = vector.shape_cast %133 : vector<1x1x32x32xf32> to vector<32x32xf32>
      %cst_159 = arith.constant dense<0.000000e+00> : vector<8x32xf32>
      %135 = tpu.matmul %105, %134, %cst_159 {dimension_numbers = #tpu.dot_dimension_numbers<[1], [0], [0], [1], [0, 0, 1, 1], [], []>} : vector<8x32xf32>, vector<32x32xf32>, vector<8x32xf32> -> vector<8x32xf32>
      %136 = arith.addf %132, %135 : vector<8x32xf32>
      %137 = math.tanh %136 : vector<8x32xf32>
      %c3_160 = arith.constant 3 : index
      %138 = arith.index_cast %104 : i32 to index
      %c0_161 = arith.constant 0 : index
      %139 = vector.load %arg9[%c3_160, %138, %c0_161] : memref<4x64x32xf32, #tpu.memory_space<vmem>>, vector<1x8x32xf32>
      %140 = vector.shape_cast %139 : vector<1x8x32xf32> to vector<8x32xf32>
      %c2_162 = arith.constant 2 : index
      %c3_163 = arith.constant 3 : index
      %c0_164 = arith.constant 0 : index
      %c0_165 = arith.constant 0 : index
      %141 = vector.load %arg3[%c2_162, %c3_163, %c0_164, %c0_165] : memref<3x4x32x32xf32, #tpu.memory_space<vmem>>, vector<1x1x32x32xf32>
      %142 = vector.shape_cast %141 : vector<1x1x32x32xf32> to vector<32x32xf32>
      %cst_166 = arith.constant dense<0.000000e+00> : vector<8x32xf32>
      %143 = tpu.matmul %105, %142, %cst_166 {dimension_numbers = #tpu.dot_dimension_numbers<[1], [0], [0], [1], [0, 0, 1, 1], [], []>} : vector<8x32xf32>, vector<32x32xf32>, vector<8x32xf32> -> vector<8x32xf32>
      %144 = arith.addf %140, %143 : vector<8x32xf32>
      %145 = arith.negf %144 : vector<8x32xf32>
      %146 = math.exp %145 : vector<8x32xf32>
      %cst_167 = arith.constant 1.000000e+00 : f32
      %147 = vector.broadcast %cst_167 : f32 to vector<8x32xf32>
      %148 = arith.addf %147, %146 : vector<8x32xf32>
      %149 = arith.divf %147, %148 : vector<8x32xf32>
      %c0_168 = arith.constant 0 : index
      %c0_169 = arith.constant 0 : index
      %150 = vector.load %arg7[%c0_168, %c0_169] : memref<8x32xf32, #tpu.memory_space<vmem>>, vector<8x32xf32>
      %151 = arith.mulf %129, %150 : vector<8x32xf32>
      %152 = arith.mulf %117, %137 : vector<8x32xf32>
      %153 = arith.addf %151, %152 : vector<8x32xf32>
      %154 = math.tanh %153 : vector<8x32xf32>
      %155 = arith.mulf %149, %154 : vector<8x32xf32>
      %c0_170 = arith.constant 0 : index
      %c0_171 = arith.constant 0 : index
      %156 = vector.load %arg7[%c0_170, %c0_171] : memref<8x32xf32, #tpu.memory_space<vmem>>, vector<8x32xf32>
      tpu.vector_store %arg7[%c0_170, %c0_171], %153 {strides = array<i32>} : memref<8x32xf32, #tpu.memory_space<vmem>>, vector<8x32xf32>,
      %c0_172 = arith.constant 0 : index
      %c0_173 = arith.constant 0 : index
      %157 = vector.load %arg6[%c0_172, %c0_173] : memref<8x32xf32, #tpu.memory_space<vmem>>, vector<8x32xf32>
      tpu.vector_store %arg6[%c0_172, %c0_173], %155 {strides = array<i32>} : memref<8x32xf32, #tpu.memory_space<vmem>>, vector<8x32xf32>,
      %158 = arith.index_cast %104 : i32 to index
      %c0_174 = arith.constant 0 : index
      %159 = vector.load %arg5[%158, %c0_174] : memref<64x32xf32, #tpu.memory_space<vmem>>, vector<8x32xf32>
      tpu.vector_store %arg5[%158, %c0_174], %155 {strides = array<i32>} : memref<64x32xf32, #tpu.memory_space<vmem>>, vector<8x32xf32>,
    }
    %c8_i32_133 = arith.constant 8 : i32
    return
  }
  func.func @transform_0(%arg0: i32) -> (i32, i32, i32) {
    %c0_i32 = arith.constant 0 : i32
    %c0_i32_0 = arith.constant 0 : i32
    %c0_i32_1 = arith.constant 0 : i32
    %c0_i32_2 = arith.constant 0 : i32
    return %c0_i32, %c0_i32_0, %c0_i32_1 : i32, i32, i32
  }
  func.func @transform_1(%arg0: i32) -> (i32, i32, i32, i32) {
    %c0_i32 = arith.constant 0 : i32
    %c0_i32_0 = arith.constant 0 : i32
    %c0_i32_1 = arith.constant 0 : i32
    %c0_i32_2 = arith.constant 0 : i32
    %c0_i32_3 = arith.constant 0 : i32
    return %c0_i32, %c0_i32_0, %c0_i32_1, %c0_i32_2 : i32, i32, i32, i32
  }
  func.func @transform_2(%arg0: i32) -> (i32, i32, i32, i32) {
    %c0_i32 = arith.constant 0 : i32
    %c0_i32_0 = arith.constant 0 : i32
    %c0_i32_1 = arith.constant 0 : i32
    %c0_i32_2 = arith.constant 0 : i32
    %c0_i32_3 = arith.constant 0 : i32
    return %c0_i32, %c0_i32_0, %c0_i32_1, %c0_i32_2 : i32, i32, i32, i32
  }
  func.func @transform_3(%arg0: i32) -> (i32, i32, i32, i32) {
    %c0_i32 = arith.constant 0 : i32
    %c0_i32_0 = arith.constant 0 : i32
    %c0_i32_1 = arith.constant 0 : i32
    %c0_i32_2 = arith.constant 0 : i32
    %c0_i32_3 = arith.constant 0 : i32
    return %c0_i32, %c0_i32_0, %c0_i32_1, %c0_i32_2 : i32, i32, i32, i32
  }
  func.func @transform_4(%arg0: i32) -> (i32, i32) {
    %c0_i32 = arith.constant 0 : i32
    %c0_i32_0 = arith.constant 0 : i32
    %c0_i32_1 = arith.constant 0 : i32
    return %c0_i32, %c0_i32_0 : i32, i32
  }
}

</mosaic_0001>

<bundles_post_ra>
// kernel: tpu_custom_call.1
= control target key start
LH: loop header
LB: loop body
LE: loop exit
PB: predicated region body
PF: predicated region fallthrough
CT: control target
= control target key end

     0   :  { %9 = vsyncpa [#allocation7], 0  ;;  %s2207_s0 = inlined_call_operand.vmem [shape: f32[4,64,32], index: 0, kind: input, shape index: {}]   ;;  %s2208_s1 = inlined_call_operand.hbm [shape: f32[2,4,32,32], index: 1, kind: input, shape index: {}]   ;;  %s2209_s2 = inlined_call_operand.vmem [shape: f32[3,4,32,32], index: 2, kind: input, shape index: {}]   ;;  %s2210_s3 = inlined_call_operand.hbm [shape: f32[2,4,1,32], index: 3, kind: input, shape index: {}]   ;;  %s2211_s4 = inlined_call_operand.vmem [shape: f32[64,32], index: 4, kind: output, shape index: {}]  }
   0x1   :  { %s17_s17 = sshll.u32 %s2208_s1, 4  ;;  %s18_s17 = int_to_ptr.hbm [resolvable:$true] %s17_s17 }
   0x2   :  { %10 = vsyncpa [#allocation9], 0  ;;  %s1739_s18 = smov [#allocation6]   ;;  %s32_s22 = sshll.u32 %s2210_s3, 4  ;;  %s33_s22 = int_to_ptr.hbm [resolvable:$true] %s32_s22 }
   0x3   :  { %s19_s19 = sshll.u32 %s1739_s18, 4  ;;  %s1740_s23 = smov 128   ;;  %s20_s19 = int_to_ptr.vmem [resolvable:$true] %s19_s19 }
   0x4   :  { %s1741_s24 = smov 8   ;;  %s1742_s25 = smov [#allocation8]  }
   0x5   :  { %25 = dma.hbm_to_vmem [thread:$0]  %s18_s17, 4096, %s20_s19, [#allocation7], %s1740_s23, %s1740_s23, %s1741_s24  }
   0x6   :  { %s34_s26 = sshll.u32 %s1742_s25, 4  ;;  %s1743_s27 = smov 16   ;;  %s35_s26 = int_to_ptr.vmem [resolvable:$true] %s34_s26 }
   0x7   :  { %s1744_s28 = smov 1  }
   0x8   :  { %40 = dma.hbm_to_vmem [thread:$0]  %s33_s22, 128, %s35_s26, [#allocation9], %s1743_s27, %s1743_s27, %s1744_s28  }
   0x9   :  { %1723 = dma.done.wait [#allocation7], 4096  }
   0xa   :  { %1724 = vsyncadd [#allocation7], 4294963200 }
   0xb   :  { %1725 = dma.done.wait [#allocation9], 128  }
   0xc   :  { %1726 = vsyncadd [#allocation9], 4294967168  ;;  %vm49_vm0 = vcmask 261120   ;;  %v1745_v0 = vmov 0.0   ;;  %s1781_s1 = smov 0  }
   0xd   :  { %50 = vst.msk [vmem:[#allocation2] sm:$0xff] %vm49_vm0, %v1745_v0 }
   0xe   :  { %51 = vst.msk [vmem:[#allocation3] sm:$0xff] %vm49_vm0, %v1745_v0 }
   0xf LB: > { %v65_v1 = vld [vmem:[%s2209_s2 + $0x18] sm:$0xff]  ;;  %v64_v4 = vld [vmem:[%s2209_s2 + $0x10] sm:$0xff]  ;;  %v63_v7 = vld [vmem:[%s2209_s2 + $0x8] sm:$0xff]  ;;  %s1426_s7 = sshll.u32 %s1729_s1, 3  ;;  %s57_s1 = sadd.s32 1, %s1729_s1   ;;  %s1729_s1 = sphi %s1781_s1, %s57_s1  }
  0x10   : > { %v1434_v2 = vld [vmem:[%s2209_s2 + $0x38] sm:$0xff]  ;;  %81 = vmatpush.msra.mxu0 %v65_v1  ;;  %v1433_v5 = vld [vmem:[%s2209_s2 + $0x30] sm:$0xff]  ;;  %v1432_v8 = vld [vmem:[%s2209_s2 + $0x28] sm:$0xff]  ;;  %s60_s10 = scalar_lea.vmem %s2207_s0, %s1426_s7  ;;  %s243_s11 = scalar_lea.vmem [#allocation4], %s1426_s7 }
  0x11   : > { %v1449_v3 = vld [vmem:[%s2209_s2 + $0x78] sm:$0xff]  ;;  %129 = vmatpush.msra.mxu1 %v1434_v2  ;;  %v1448_v6 = vld [vmem:[%s2209_s2 + $0x70] sm:$0xff]  ;;  %v1447_v9 = vld [vmem:[%s2209_s2 + $0x68] sm:$0xff]  ;;  %p54_p0 = scmp.ge.s32.totalorder %s57_s1, 8  }
  0x12   : > { %207 = vmatpush.msra.mxu3 %v1449_v3  ;;  %82 = vmatpush.msra.mxu0 %v64_v4  ;;  %v62_v10 = vld [vmem:[%s2209_s2] sm:$0xff]  ;;  %v1442_v12 = vld [vmem:[%s2209_s2 + $0x58] sm:$0xff]  ;;  %v1441_v15 = vld [vmem:[%s2209_s2 + $0x50] sm:$0xff]  ;;  %s1960_s0 = smov (%p54_p0), 0  }
  0x13   : > { %130 = vmatpush.msra.mxu1 %v1433_v5  ;;  %v1431_v11 = vld [vmem:[%s2209_s2 + $0x20] sm:$0xff]  ;;  %177 = vmatpush.msra.mxu2 %v1442_v12  ;;  %v1440_v16 = vld [vmem:[%s2209_s2 + $0x48] sm:$0xff] }
  0x14   : > { %208 = vmatpush.msra.mxu3 %v1448_v6  ;;  %83 = vmatpush.msra.mxu0 %v63_v7  ;;  %v1446_v13 = vld [vmem:[%s2209_s2 + $0x60] sm:$0xff] }
  0x15   : > { %131 = vmatpush.msra.mxu1 %v1432_v8  ;;  %v59_v14 = vld [vmem:[#allocation2] sm:$0xff]  ;;  %178 = vmatpush.msra.mxu2 %v1441_v15  ;;  %v235_v59 = vld [vmem:[#allocation3] sm:$0xff] }
  0x16   : > { %209 = vmatpush.msra.mxu3 %v1447_v9  ;;  %84 = vmatpush.msra.mxu0 %v62_v10  ;;  %v1439_v17 = vld [vmem:[%s2209_s2 + $0x40] sm:$0xff] }
  0x17   : > { %132 = vmatpush.msra.mxu1 %v1431_v11  ;;  %1427 = vmatmul.msk.f32.vlgmr.msra.gmra.mxu0 %vm49_vm0, %v59_v14  ;;  %v61_v18 = vld [vmem:[%s60_s10] sm:$0xff] }
  0x18   : > { %210 = vmatpush.msra.mxu3 %v1446_v13  ;;  %1435 = vmatmul.msk.f32.vlgmr.msra.gmra.mxu1 %vm49_vm0, %v59_v14  ;;  %v1430_v19 = vld [vmem:[%s60_s10 + $0x40] sm:$0xff]  ;;  %v438_v13 = vld [vmem:[#allocation6 + $0x58] sm:$0xff] (%p54_p0) }
  0x19   : > { %1450 = vmatmul.msk.f32.vlgmr.msra.gmra.mxu3 %vm49_vm0, %v59_v14  ;;  %179 = vmatpush.msra.mxu2 %v1440_v16  ;;  %v1445_v26 = vld [vmem:[%s60_s10 + $0xc0] sm:$0xff] }
  0x1a   : > { %v1438_v34 = vld [vmem:[%s60_s10 + $0x80] sm:$0xff] }
  0x1b   : > { %180 = vmatpush.msra.mxu2 %v1439_v17  ;;  %v437_v15 = vld [vmem:[#allocation6 + $0x50] sm:$0xff] (%p54_p0)  ;;  %v436_v17 = vld [vmem:[#allocation6 + $0x48] sm:$0xff] (%p54_p0) }
  0x1c   : > { %1443 = vmatmul.msk.f32.vlgmr.msra.gmra.mxu2 %vm49_vm0, %v59_v14  ;;  %v530_v14 = vld [vmem:[#allocation6 + $0x78] sm:$0xff] (%p54_p0)  ;;  %v529_v16 = vld [vmem:[#allocation6 + $0x70] sm:$0xff] (%p54_p0) }
  0x1d   :  { %480 = vmatpush.msra.mxu2 (%p54_p0), %v438_v13  ;;  %572 = vmatpush.msra.mxu3 (%p54_p0), %v530_v14 }
  0x1f   :  { %481 = vmatpush.msra.mxu2 (%p54_p0), %v437_v15  ;;  %573 = vmatpush.msra.mxu3 (%p54_p0), %v529_v16 }
  0x21   :  { %482 = vmatpush.msra.mxu2 (%p54_p0), %v436_v17 }
  0x94   : > { %v86_v20 = vpop.f32.mrf.mxu0 }
  0x95   : > { %v89_v21 = vadd.f32 %v86_v20, %v61_v18  ;;  %v134_v22 = vpop.f32.mrf.mxu1  ;;  %v528_v18 = vld [vmem:[#allocation6 + $0x68] sm:$0xff] (%p54_p0)  ;;  %v346_v20 = vld [vmem:[#allocation6 + $0x38] sm:$0xff] (%p54_p0) }
  0x96   : > { %v137_v23 = vadd.f32 %v1430_v19, %v134_v22  ;;  %v256_v19 = vld [vmem:[#allocation6 + $0x18] sm:$0xff] (%p54_p0)  ;;  %388 = vmatpush.msra.mxu1 (%p54_p0), %v346_v20  ;;  %v435_v22 = vld [vmem:[#allocation6 + $0x40] sm:$0xff] (%p54_p0)  ;;  %574 = vmatpush.msra.mxu3 (%p54_p0), %v528_v18 }
  0x97   : > { %v1428_v24 = vmul.f32 -1.442695, %v89_v21  ;;  %v255_v21 = vld [vmem:[#allocation6 + $0x10] sm:$0xff] (%p54_p0)  ;;  %297 = vmatpush.msra.mxu0 (%p54_p0), %v256_v19  ;;  %483 = vmatpush.msra.mxu2 (%p54_p0), %v435_v22 }
  0x98   : > { %v1436_v25 = vmul.f32 -1.442695, %v137_v23  ;;  %v527_v23 = vld [vmem:[#allocation6 + $0x60] sm:$0xff] (%p54_p0) }
  0x99   : > { %1607 = vpow2.f32 %v1428_v24  ;;  %v345_v24 = vld [vmem:[#allocation6 + $0x30] sm:$0xff] (%p54_p0)  ;;  %298 = vmatpush.msra.mxu0 (%p54_p0), %v255_v21  ;;  %575 = vmatpush.msra.mxu3 (%p54_p0), %v527_v23 }
  0x9a   : > { %1609 = vpow2.f32 %v1436_v25  ;;  %389 = vmatpush.msra.mxu1 (%p54_p0), %v345_v24 }
  0x9c   : > { %v212_v27 = vpop.f32.mrf.mxu3 }
  0x9d   : > { %v215_v28 = vadd.f32 %v1445_v26, %v212_v27  ;;  %v254_v26 = vld [vmem:[#allocation6 + $0x8] sm:$0xff] (%p54_p0) }
  0x9e   :  { %v344_v27 = vld [vmem:[#allocation6 + $0x28] sm:$0xff] (%p54_p0)  ;;  %299 = vmatpush.msra.mxu0 (%p54_p0), %v254_v26 }
  0x9f   : > { %v1451_v29 = vmul.f32 -1.442695, %v215_v28  ;;  %v1608_v30 = vpop.eup %1607  ;;  %v182_v35 = vpop.f32.mrf.mxu2  ;;  %v253_v28 = vld [vmem:[#allocation6] sm:$0xff] (%p54_p0)  ;;  %390 = vmatpush.msra.mxu1 (%p54_p0), %v344_v27 }
  0xa0   : > { %v1610_v31 = vpop.eup %1609  ;;  %v93_v32 = vadd.f32 1.0, %v1608_v30  ;;  %v185_v37 = vadd.f32 %v1438_v34, %v182_v35  ;;  %300 = vmatpush.msra.mxu0 (%p54_p0), %v253_v28 }
  0xa1   : > { %1611 = vpow2.f32 %v1451_v29  ;;  %v141_v33 = vadd.f32 1.0, %v1610_v31  ;;  %v343_v29 = vld [vmem:[#allocation6 + $0x20] sm:$0xff] (%p54_p0) }
  0xa2   : > { %1613 = vrcp.f32 %v93_v32  ;;  %v105_v45 = vand.u32 2147483648, %v93_v32  ;;  %v103_v48 = vand.u32 2147483647, %v93_v32  ;;  %vm99_vm3 = vweird.f32 %v93_v32  ;;  %391 = vmatpush.msra.mxu1 (%p54_p0), %v343_v29 }
  0xa3   : > { %1615 = vrcp.f32 %v141_v33  ;;  %v153_v46 = vand.u32 2147483648, %v141_v33  ;;  %v151_v50 = vand.u32 2147483647, %v141_v33  ;;  %vm147_vm4 = vweird.f32 %v141_v33 }
  0xa4   : > { %v106_v55 = vor.u32 1.1754944e-38, %v105_v45  ;;  %vm104_vm7 = vcmp.eq.f32.partialorder %v103_v48, 8.507059e+37 }
  0xa5   : > { %v154_v57 = vor.u32 1.1754944e-38, %v153_v46  ;;  %vm152_vm8 = vcmp.eq.f32.partialorder %v151_v50, 8.507059e+37 }
  0xa7   : > { %v1612_v36 = vpop.eup %1611 }
  0xa8   : > { %v219_v38 = vadd.f32 1.0, %v1612_v36  ;;  %v1614_v39 = vpop.eup %1613 }
  0xa9   : > { %v1616_v40 = vpop.eup %1615  ;;  %v95_v41 = vmul.f32 %v1614_v39, %v93_v32  ;;  %vm100_vm1 = vweird.f32 %v1614_v39 }
  0xaa   : > { %1617 = vrcp.f32 %v219_v38  ;;  %v143_v42 = vmul.f32 %v1616_v40, %v141_v33  ;;  %vm148_vm2 = vweird.f32 %v1616_v40  ;;  %vm101_vm5 = vmor %vm99_vm3, %vm100_vm1  ;;  %v231_v6 = vand.u32 2147483648, %v219_v38 }
  0xab   : > { %1619 = vtanh.f32 %v185_v37  ;;  %v96_v43 = vsub.f32 1.0, %v95_v41  ;;  %vm149_vm6 = vmor %vm147_vm4, %vm148_vm2  ;;  %vm225_vm10 = vweird.f32 %v219_v38  ;;  %v229_v7 = vand.u32 2147483647, %v219_v38  ;;  %v1888_v37 = vld [vmem:[#allocation8] ss:$0 sm:$0xff] (%p54_p0) }
  0xac   : > { %v144_v44 = vsub.f32 1.0, %v143_v42  ;;  %v232_v9 = vor.u32 1.1754944e-38, %v231_v6 }
  0xad   : > { %v97_v47 = vmul.f32 %v1614_v39, %v96_v43  ;;  %vm230_vm12 = vcmp.eq.f32.partialorder %v229_v7, 8.507059e+37 }
  0xae   : > { %v145_v49 = vmul.f32 %v1616_v40, %v144_v44 }
  0xaf   : > { %v98_v52 = vadd.f32 %v1614_v39, %v97_v47 }
  0xb0   : > { %v1618_v51 = vpop.eup %1617  ;;  %v146_v56 = vadd.f32 %v1616_v40, %v145_v49 }
  0xb1   : > { %v1620_v53 = vpop.eup %1619  ;;  %v221_v54 = vmul.f32 %v1618_v51, %v219_v38  ;;  %v102_v58 = vsel %vm101_vm5, %v1614_v39, %v98_v52  ;;  %vm226_vm9 = vweird.f32 %v1618_v51  ;;  %v1890_v38 = vld [vmem:[#allocation8 + $0x1] ss:$0 sm:$0xff] (%p54_p0)  ;;  %v1892_v39 = vld [vmem:[#allocation8 + $0x2] ss:$0 sm:$0xff] (%p54_p0) }
  0xb2   : > { %v107_v61 = vsel %vm104_vm7, %v106_v55, %v102_v58  ;;  %v150_v62 = vsel %vm149_vm6, %v1616_v40, %v146_v56  ;;  %vm227_vm11 = vmor %vm225_vm10, %vm226_vm9  ;;  %v1894_v40 = vld [vmem:[#allocation8 + $0x3] ss:$0 sm:$0xff] (%p54_p0) }
  0xb3   : > { %v222_v60 = vsub.f32 1.0, %v221_v54  ;;  %v155_v63 = vsel %vm152_vm8, %v154_v57, %v150_v62  ;;  %v237_v1 = vmul.f32 %v1620_v53, %v107_v61 }
  0xb4   : > { %v236_v3 = vmul.f32 %v235_v59, %v155_v63 }
  0xb5   : > { %v223_v2 = vmul.f32 %v1618_v51, %v222_v60 }
  0xb6   : > { %v238_v4 = vadd.f32 %v237_v1, %v236_v3 }
  0xb7   : > { %v224_v5 = vadd.f32 %v1618_v51, %v223_v2 }
  0xb8   : > { %1621 = vtanh.f32 %v238_v4  ;;  %241 = vst.msk [vmem:[#allocation3] sm:$0xff] %vm49_vm0, %v238_v4 }
  0xb9   : > { %v228_v8 = vsel %vm227_vm11, %v1618_v51, %v224_v5  ;;  %611 = vst.msk [vmem:[#allocation3] sm:$0xff] (%p54_p0), %vm49_vm0, %v1745_v0 }
  0xba   : > { %v233_v11 = vsel %vm230_vm12, %v232_v9, %v228_v8 }
  0xbe   : > { %v1622_v10 = vpop.eup %1621  ;;  %56 = sbr.rel (!%p54_p0) target bundleno = 15 (0xf), region = 108 }
  0xbf   : > { %v240_v12 = vmul.f32 %v1622_v10, %v233_v11 }
  0xc1   : > { %242 = vst.msk [vmem:[#allocation2] sm:$0xff] %vm49_vm0, %v240_v12 }
  0xc2   : > { %244 = vst.msk [vmem:[%s243_s11] sm:$0xff] %vm49_vm0, %v240_v12 }
  0xc3   :  { %610 = vst.msk [vmem:[#allocation2] sm:$0xff] %vm49_vm0, %v1745_v0 }
  0xc9   :  { %v426_v25 = vld [vmem:[#allocation4] sm:$0xff]  ;;  %v427_v30 = vld [vmem:[#allocation4 + $0x8] sm:$0xff]  ;;  %v428_v31 = vld [vmem:[#allocation4 + $0x10] sm:$0xff] }
  0xca   :  { %1468 = vmatmul.msk.f32.vlgmr.msra.gmra.mxu2 %vm49_vm0, %v426_v25  ;;  %1476 = vmatmul.msk.f32.vlgmr.msra.gmra.mxu3 %vm49_vm0, %v426_v25  ;;  %v429_v32 = vld [vmem:[#allocation4 + $0x18] sm:$0xff]  ;;  %v430_v33 = vld [vmem:[#allocation4 + $0x20] sm:$0xff]  ;;  %v431_v34 = vld [vmem:[#allocation4 + $0x28] sm:$0xff] }
  0xcb   :  { %1452 = vmatmul.msk.f32.vlgmr.msra.gmra.mxu0 %vm49_vm0, %v426_v25  ;;  %1460 = vmatmul.msk.f32.vlgmr.msra.gmra.mxu1 %vm49_vm0, %v426_v25  ;;  %v432_v35 = vld [vmem:[#allocation4 + $0x30] sm:$0xff]  ;;  %v433_v36 = vld [vmem:[#allocation4 + $0x38] sm:$0xff] }
  0xd2   :  { %1469 = vmatmul.msk.f32.gmra.mxu2 %vm49_vm0, %v427_v30  ;;  %1477 = vmatmul.msk.f32.gmra.mxu3 %vm49_vm0, %v427_v30 }
  0xd3   :  { %1453 = vmatmul.msk.f32.gmra.mxu0 %vm49_vm0, %v427_v30  ;;  %1461 = vmatmul.msk.f32.gmra.mxu1 %vm49_vm0, %v427_v30 }
  0xda   :  { %1470 = vmatmul.msk.f32.gmra.mxu2 %vm49_vm0, %v428_v31  ;;  %1478 = vmatmul.msk.f32.gmra.mxu3 %vm49_vm0, %v428_v31 }
  0xdb   :  { %1454 = vmatmul.msk.f32.gmra.mxu0 %vm49_vm0, %v428_v31  ;;  %1462 = vmatmul.msk.f32.gmra.mxu1 %vm49_vm0, %v428_v31 }
  0xe2   :  { %1471 = vmatmul.msk.f32.gmra.mxu2 %vm49_vm0, %v429_v32  ;;  %1479 = vmatmul.msk.f32.gmra.mxu3 %vm49_vm0, %v429_v32 }
  0xe3   :  { %1455 = vmatmul.msk.f32.gmra.mxu0 %vm49_vm0, %v429_v32  ;;  %1463 = vmatmul.msk.f32.gmra.mxu1 %vm49_vm0, %v429_v32 }
  0xea   :  { %1472 = vmatmul.msk.f32.gmra.mxu2 %vm49_vm0, %v430_v33  ;;  %1480 = vmatmul.msk.f32.gmra.mxu3 %vm49_vm0, %v430_v33 }
  0xeb   :  { %1456 = vmatmul.msk.f32.gmra.mxu0 %vm49_vm0, %v430_v33  ;;  %1464 = vmatmul.msk.f32.gmra.mxu1 %vm49_vm0, %v430_v33 }
  0xf2   :  { %1473 = vmatmul.msk.f32.gmra.mxu2 %vm49_vm0, %v431_v34  ;;  %1481 = vmatmul.msk.f32.gmra.mxu3 %vm49_vm0, %v431_v34 }
  0xf3   :  { %1457 = vmatmul.msk.f32.gmra.mxu0 %vm49_vm0, %v431_v34  ;;  %1465 = vmatmul.msk.f32.gmra.mxu1 %vm49_vm0, %v431_v34 }
  0xfa   :  { %1474 = vmatmul.msk.f32.gmra.mxu2 %vm49_vm0, %v432_v35  ;;  %1482 = vmatmul.msk.f32.gmra.mxu3 %vm49_vm0, %v432_v35 }
  0xfb   :  { %1458 = vmatmul.msk.f32.gmra.mxu0 %vm49_vm0, %v432_v35  ;;  %1466 = vmatmul.msk.f32.gmra.mxu1 %vm49_vm0, %v432_v35 }
 0x102   :  { %1475 = vmatmul.msk.f32.gmra.mxu2 %vm49_vm0, %v433_v36  ;;  %1483 = vmatmul.msk.f32.gmra.mxu3 %vm49_vm0, %v433_v36 }
 0x103   :  { %1459 = vmatmul.msk.f32.gmra.mxu0 %vm49_vm0, %v433_v36  ;;  %1467 = vmatmul.msk.f32.gmra.mxu1 %vm49_vm0, %v433_v36 }
 0x148   :  { %v302_v41 = vpop.f32.mrf.mxu0  ;;  %v393_v42 = vpop.f32.mrf.mxu1 }
 0x149   :  { %v303_v43 = vadd.f32 %v1888_v37, %v302_v41  ;;  %v394_v44 = vadd.f32 %v1890_v38, %v393_v42 }
 0x14b   :  { %326 = vst.msk [vmem:[#allocation5] sm:$0xff] %vm49_vm0, %v303_v43 }
 0x14c   :  { %418 = vst.msk [vmem:[#allocation5 + $0x40] sm:$0xff] %vm49_vm0, %v394_v44 }
 0x14d   :  { %v485_v45 = vpop.f32.mrf.mxu2  ;;  %v577_v46 = vpop.f32.mrf.mxu3 }
 0x14e   :  { %v486_v47 = vadd.f32 %v1892_v39, %v485_v45  ;;  %v578_v48 = vadd.f32 %v1894_v40, %v577_v46 }
 0x150   :  { %510 = vst.msk [vmem:[#allocation5 + $0x80] sm:$0xff] %vm49_vm0, %v486_v47  ;;  %v305_v49 = vpop.f32.mrf.mxu0  ;;  %v396_v50 = vpop.f32.mrf.mxu1 }
 0x151   :  { %602 = vst.msk [vmem:[#allocation5 + $0xc0] sm:$0xff] %vm49_vm0, %v578_v48  ;;  %v306_v51 = vadd.f32 %v1888_v37, %v305_v49  ;;  %v397_v52 = vadd.f32 %v1890_v38, %v396_v50 }
 0x153   :  { %327 = vst.msk [vmem:[#allocation5 + $0x8] sm:$0xff] %vm49_vm0, %v306_v51 }
 0x154   :  { %419 = vst.msk [vmem:[#allocation5 + $0x48] sm:$0xff] %vm49_vm0, %v397_v52 }
 0x155   :  { %v488_v53 = vpop.f32.mrf.mxu2  ;;  %v580_v54 = vpop.f32.mrf.mxu3 }
 0x156   :  { %v489_v55 = vadd.f32 %v1892_v39, %v488_v53  ;;  %v581_v56 = vadd.f32 %v1894_v40, %v580_v54 }
 0x158   :  { %511 = vst.msk [vmem:[#allocation5 + $0x88] sm:$0xff] %vm49_vm0, %v489_v55  ;;  %v308_v57 = vpop.f32.mrf.mxu0  ;;  %v399_v58 = vpop.f32.mrf.mxu1 }
 0x159   :  { %603 = vst.msk [vmem:[#allocation5 + $0xc8] sm:$0xff] %vm49_vm0, %v581_v56  ;;  %v309_v59 = vadd.f32 %v1888_v37, %v308_v57  ;;  %v400_v60 = vadd.f32 %v1890_v38, %v399_v58 }
 0x15b   :  { %328 = vst.msk [vmem:[#allocation5 + $0x10] sm:$0xff] %vm49_vm0, %v309_v59 }
 0x15c   :  { %420 = vst.msk [vmem:[#allocation5 + $0x50] sm:$0xff] %vm49_vm0, %v400_v60 }
 0x15d   :  { %v491_v61 = vpop.f32.mrf.mxu2  ;;  %v583_v62 = vpop.f32.mrf.mxu3 }
 0x15e   :  { %v492_v63 = vadd.f32 %v1892_v39, %v491_v61  ;;  %v584_v1 = vadd.f32 %v1894_v40, %v583_v62 }
 0x160   :  { %512 = vst.msk [vmem:[#allocation5 + $0x90] sm:$0xff] %vm49_vm0, %v492_v63  ;;  %v311_v2 = vpop.f32.mrf.mxu0  ;;  %v402_v3 = vpop.f32.mrf.mxu1 }
 0x161   :  { %604 = vst.msk [vmem:[#allocation5 + $0xd0] sm:$0xff] %vm49_vm0, %v584_v1  ;;  %v312_v4 = vadd.f32 %v1888_v37, %v311_v2  ;;  %v403_v5 = vadd.f32 %v1890_v38, %v402_v3 }
 0x163   :  { %329 = vst.msk [vmem:[#allocation5 + $0x18] sm:$0xff] %vm49_vm0, %v312_v4 }
 0x164   :  { %421 = vst.msk [vmem:[#allocation5 + $0x58] sm:$0xff] %vm49_vm0, %v403_v5 }
 0x165   :  { %v494_v6 = vpop.f32.mrf.mxu2  ;;  %v586_v7 = vpop.f32.mrf.mxu3 }
 0x166   :  { %v495_v8 = vadd.f32 %v1892_v39, %v494_v6  ;;  %v587_v9 = vadd.f32 %v1894_v40, %v586_v7 }
 0x168   :  { %513 = vst.msk [vmem:[#allocation5 + $0x98] sm:$0xff] %vm49_vm0, %v495_v8  ;;  %v314_v10 = vpop.f32.mrf.mxu0  ;;  %v405_v11 = vpop.f32.mrf.mxu1 }
 0x169   :  { %605 = vst.msk [vmem:[#allocation5 + $0xd8] sm:$0xff] %vm49_vm0, %v587_v9  ;;  %v315_v12 = vadd.f32 %v1888_v37, %v314_v10  ;;  %v406_v13 = vadd.f32 %v1890_v38, %v405_v11 }
 0x16b   :  { %330 = vst.msk [vmem:[#allocation5 + $0x20] sm:$0xff] %vm49_vm0, %v315_v12 }
 0x16c   :  { %422 = vst.msk [vmem:[#allocation5 + $0x60] sm:$0xff] %vm49_vm0, %v406_v13 }
 0x16d   :  { %v497_v14 = vpop.f32.mrf.mxu2  ;;  %v589_v15 = vpop.f32.mrf.mxu3 }
 0x16e   :  { %v498_v16 = vadd.f32 %v1892_v39, %v497_v14  ;;  %v590_v17 = vadd.f32 %v1894_v40, %v589_v15 }
 0x170   :  { %514 = vst.msk [vmem:[#allocation5 + $0xa0] sm:$0xff] %vm49_vm0, %v498_v16  ;;  %v317_v18 = vpop.f32.mrf.mxu0  ;;  %v408_v19 = vpop.f32.mrf.mxu1 }
 0x171   :  { %606 = vst.msk [vmem:[#allocation5 + $0xe0] sm:$0xff] %vm49_vm0, %v590_v17  ;;  %v318_v20 = vadd.f32 %v1888_v37, %v317_v18  ;;  %v409_v21 = vadd.f32 %v1890_v38, %v408_v19 }
 0x173   :  { %331 = vst.msk [vmem:[#allocation5 + $0x28] sm:$0xff] %vm49_vm0, %v318_v20 }
 0x174   :  { %423 = vst.msk [vmem:[#allocation5 + $0x68] sm:$0xff] %vm49_vm0, %v409_v21 }
 0x175   :  { %v500_v22 = vpop.f32.mrf.mxu2  ;;  %v592_v23 = vpop.f32.mrf.mxu3 }
 0x176   :  { %v501_v24 = vadd.f32 %v1892_v39, %v500_v22  ;;  %v593_v25 = vadd.f32 %v1894_v40, %v592_v23 }
 0x178   :  { %515 = vst.msk [vmem:[#allocation5 + $0xa8] sm:$0xff] %vm49_vm0, %v501_v24  ;;  %v320_v26 = vpop.f32.mrf.mxu0  ;;  %v411_v27 = vpop.f32.mrf.mxu1 }
 0x179   :  { %607 = vst.msk [vmem:[#allocation5 + $0xe8] sm:$0xff] %vm49_vm0, %v593_v25  ;;  %v321_v28 = vadd.f32 %v1888_v37, %v320_v26  ;;  %v412_v29 = vadd.f32 %v1890_v38, %v411_v27 }
 0x17b   :  { %332 = vst.msk [vmem:[#allocation5 + $0x30] sm:$0xff] %vm49_vm0, %v321_v28 }
 0x17c   :  { %424 = vst.msk [vmem:[#allocation5 + $0x70] sm:$0xff] %vm49_vm0, %v412_v29 }
 0x17d   :  { %v503_v30 = vpop.f32.mrf.mxu2  ;;  %v595_v31 = vpop.f32.mrf.mxu3 }
 0x17e   :  { %v504_v32 = vadd.f32 %v1892_v39, %v503_v30  ;;  %v596_v33 = vadd.f32 %v1894_v40, %v595_v31 }
 0x180   :  { %516 = vst.msk [vmem:[#allocation5 + $0xb0] sm:$0xff] %vm49_vm0, %v504_v32  ;;  %v323_v34 = vpop.f32.mrf.mxu0  ;;  %v414_v35 = vpop.f32.mrf.mxu1 }
 0x181   :  { %608 = vst.msk [vmem:[#allocation5 + $0xf0] sm:$0xff] %vm49_vm0, %v596_v33  ;;  %v324_v36 = vadd.f32 %v1888_v37, %v323_v34  ;;  %v415_v41 = vadd.f32 %v1890_v38, %v414_v35 }
 0x183   :  { %333 = vst.msk [vmem:[#allocation5 + $0x38] sm:$0xff] %vm49_vm0, %v324_v36 }
 0x184   :  { %425 = vst.msk [vmem:[#allocation5 + $0x78] sm:$0xff] %vm49_vm0, %v415_v41 }
 0x185   :  { %v506_v42 = vpop.f32.mrf.mxu2  ;;  %v598_v43 = vpop.f32.mrf.mxu3 }
 0x186   :  { %v507_v44 = vadd.f32 %v1892_v39, %v506_v42  ;;  %v599_v45 = vadd.f32 %v1894_v40, %v598_v43 }
 0x188   :  { %517 = vst.msk [vmem:[#allocation5 + $0xb8] sm:$0xff] %vm49_vm0, %v507_v44 }
 0x189   :  { %609 = vst.msk [vmem:[#allocation5 + $0xf8] sm:$0xff] %vm49_vm0, %v599_v45 }
 0x18a LB: > { %v1488_v37 = vld [vmem:[%s2209_s2 + $0x98] sm:$0xff]  ;;  %v1487_v40 = vld [vmem:[%s2209_s2 + $0x90] sm:$0xff]  ;;  %v1486_v48 = vld [vmem:[%s2209_s2 + $0x88] sm:$0xff]  ;;  %s1484_s15 = sshll.u32 %s1733_s0, 3  ;;  %s617_s0 = sadd.s32 1, %s1733_s0   ;;  %s1733_s0 = sphi %s1960_s0, %s617_s0  }
 0x18b   : > { %v1496_v38 = vld [vmem:[%s2209_s2 + $0xb8] sm:$0xff]  ;;  %642 = vmatpush.msra.mxu0 %v1488_v37  ;;  %v1495_v46 = vld [vmem:[%s2209_s2 + $0xb0] sm:$0xff]  ;;  %v1494_v49 = vld [vmem:[%s2209_s2 + $0xa8] sm:$0xff]  ;;  %s620_s16 = scalar_lea.vmem [#allocation5], %s1484_s15  ;;  %s804_s17 = scalar_lea.vmem [#allocation4], %s1484_s15 }
 0x18c   : > { %v1511_v39 = vld [vmem:[%s2209_s2 + $0xf8] sm:$0xff]  ;;  %690 = vmatpush.msra.mxu1 %v1496_v38  ;;  %v1510_v47 = vld [vmem:[%s2209_s2 + $0xf0] sm:$0xff]  ;;  %v1509_v50 = vld [vmem:[%s2209_s2 + $0xe8] sm:$0xff]  ;;  %p614_p1 = scmp.ge.s32.totalorder %s617_s0, 8  }
 0x18d   : > { %768 = vmatpush.msra.mxu3 %v1511_v39  ;;  %643 = vmatpush.msra.mxu0 %v1487_v40  ;;  %v1485_v51 = vld [vmem:[%s2209_s2 + $0x80] sm:$0xff]  ;;  %v1504_v53 = vld [vmem:[%s2209_s2 + $0xd8] sm:$0xff]  ;;  %v1503_v56 = vld [vmem:[%s2209_s2 + $0xd0] sm:$0xff]  ;;  %s2136_s0 = smov (%p614_p1), 0  }
 0x18e   : > { %691 = vmatpush.msra.mxu1 %v1495_v46  ;;  %v1493_v52 = vld [vmem:[%s2209_s2 + $0xa0] sm:$0xff]  ;;  %738 = vmatpush.msra.mxu2 %v1504_v53  ;;  %v1502_v57 = vld [vmem:[%s2209_s2 + $0xc8] sm:$0xff] }
 0x18f   : > { %769 = vmatpush.msra.mxu3 %v1510_v47  ;;  %644 = vmatpush.msra.mxu0 %v1486_v48  ;;  %v1508_v54 = vld [vmem:[%s2209_s2 + $0xe0] sm:$0xff]  ;;  %v796_v41 = vld [vmem:[#allocation3] sm:$0xff] }
 0x190   : > { %692 = vmatpush.msra.mxu1 %v1494_v49  ;;  %v619_v55 = vld [vmem:[#allocation2] sm:$0xff]  ;;  %739 = vmatpush.msra.mxu2 %v1503_v56 }
 0x191   : > { %770 = vmatpush.msra.mxu3 %v1509_v50  ;;  %645 = vmatpush.msra.mxu0 %v1485_v51  ;;  %v1501_v58 = vld [vmem:[%s2209_s2 + $0xc0] sm:$0xff] }
 0x192   : > { %693 = vmatpush.msra.mxu1 %v1493_v52  ;;  %1489 = vmatmul.msk.f32.vlgmr.msra.gmra.mxu0 %vm49_vm0, %v619_v55  ;;  %v621_v59 = vld [vmem:[%s620_s16] sm:$0xff] }
 0x193   : > { %771 = vmatpush.msra.mxu3 %v1508_v54  ;;  %1497 = vmatmul.msk.f32.vlgmr.msra.gmra.mxu1 %vm49_vm0, %v619_v55  ;;  %v1492_v60 = vld [vmem:[%s620_s16 + $0x40] sm:$0xff]  ;;  %v1000_v54 = vld [vmem:[#allocation6 + $0xd8] sm:$0xff] (%p614_p1) }
 0x194   : > { %1512 = vmatmul.msk.f32.vlgmr.msra.gmra.mxu3 %vm49_vm0, %v619_v55  ;;  %740 = vmatpush.msra.mxu2 %v1502_v57  ;;  %v1507_v4 = vld [vmem:[%s620_s16 + $0xc0] sm:$0xff] }
 0x195   : > { %v1500_v12 = vld [vmem:[%s620_s16 + $0x80] sm:$0xff] }
 0x196   : > { %741 = vmatpush.msra.mxu2 %v1501_v58  ;;  %v999_v56 = vld [vmem:[#allocation6 + $0xd0] sm:$0xff] (%p614_p1)  ;;  %v998_v58 = vld [vmem:[#allocation6 + $0xc8] sm:$0xff] (%p614_p1) }
 0x197   : > { %1505 = vmatmul.msk.f32.vlgmr.msra.gmra.mxu2 %vm49_vm0, %v619_v55  ;;  %v1091_v55 = vld [vmem:[#allocation6 + $0xf8] sm:$0xff] (%p614_p1)  ;;  %v1090_v57 = vld [vmem:[#allocation6 + $0xf0] sm:$0xff] (%p614_p1) }
 0x198   :  { %1042 = vmatpush.msra.mxu2 (%p614_p1), %v1000_v54  ;;  %1133 = vmatpush.msra.mxu3 (%p614_p1), %v1091_v55 }
 0x19a   :  { %1043 = vmatpush.msra.mxu2 (%p614_p1), %v999_v56  ;;  %1134 = vmatpush.msra.mxu3 (%p614_p1), %v1090_v57 }
 0x19c   :  { %1044 = vmatpush.msra.mxu2 (%p614_p1), %v998_v58 }
 0x20f   : > { %v647_v61 = vpop.f32.mrf.mxu0 }
 0x210   : > { %v650_v62 = vadd.f32 %v647_v61, %v621_v59  ;;  %v695_v63 = vpop.f32.mrf.mxu1  ;;  %v1089_v59 = vld [vmem:[#allocation6 + $0xe8] sm:$0xff] (%p614_p1)  ;;  %v909_v61 = vld [vmem:[#allocation6 + $0xb8] sm:$0xff] (%p614_p1) }
 0x211   : > { %v698_v1 = vadd.f32 %v1492_v60, %v695_v63  ;;  %v818_v60 = vld [vmem:[#allocation6 + $0x98] sm:$0xff] (%p614_p1)  ;;  %951 = vmatpush.msra.mxu1 (%p614_p1), %v909_v61  ;;  %v997_v63 = vld [vmem:[#allocation6 + $0xc0] sm:$0xff] (%p614_p1)  ;;  %1135 = vmatpush.msra.mxu3 (%p614_p1), %v1089_v59 }
 0x212   : > { %v1490_v2 = vmul.f32 -1.442695, %v650_v62  ;;  %v817_v62 = vld [vmem:[#allocation6 + $0x90] sm:$0xff] (%p614_p1)  ;;  %860 = vmatpush.msra.mxu0 (%p614_p1), %v818_v60  ;;  %1045 = vmatpush.msra.mxu2 (%p614_p1), %v997_v63 }
 0x213   : > { %v1498_v3 = vmul.f32 -1.442695, %v698_v1  ;;  %v1088_v1 = vld [vmem:[#allocation6 + $0xe0] sm:$0xff] (%p614_p1) }
 0x214   : > { %1627 = vpow2.f32 %v1490_v2  ;;  %v908_v2 = vld [vmem:[#allocation6 + $0xb0] sm:$0xff] (%p614_p1)  ;;  %861 = vmatpush.msra.mxu0 (%p614_p1), %v817_v62  ;;  %1136 = vmatpush.msra.mxu3 (%p614_p1), %v1088_v1 }
 0x215   : > { %1629 = vpow2.f32 %v1498_v3  ;;  %952 = vmatpush.msra.mxu1 (%p614_p1), %v908_v2 }
 0x217   : > { %v773_v5 = vpop.f32.mrf.mxu3 }
 0x218   : > { %v776_v6 = vadd.f32 %v1507_v4, %v773_v5  ;;  %v816_v4 = vld [vmem:[#allocation6 + $0x88] sm:$0xff] (%p614_p1) }
 0x219   :  { %v907_v5 = vld [vmem:[#allocation6 + $0xa8] sm:$0xff] (%p614_p1)  ;;  %862 = vmatpush.msra.mxu0 (%p614_p1), %v816_v4 }
 0x21a   : > { %v1513_v7 = vmul.f32 -1.442695, %v776_v6  ;;  %v1628_v8 = vpop.eup %1627  ;;  %v743_v13 = vpop.f32.mrf.mxu2  ;;  %v906_v6 = vld [vmem:[#allocation6 + $0xa0] sm:$0xff] (%p614_p1)  ;;  %953 = vmatpush.msra.mxu1 (%p614_p1), %v907_v5 }
 0x21b   : > { %v1630_v9 = vpop.eup %1629  ;;  %v654_v10 = vadd.f32 1.0, %v1628_v8  ;;  %v746_v15 = vadd.f32 %v1500_v12, %v743_v13 }
 0x21c   : > { %1631 = vpow2.f32 %v1513_v7  ;;  %v702_v11 = vadd.f32 1.0, %v1630_v9  ;;  %954 = vmatpush.msra.mxu1 (%p614_p1), %v906_v6 }
 0x21d   : > { %1633 = vrcp.f32 %v654_v10  ;;  %v666_v23 = vand.u32 2147483648, %v654_v10  ;;  %v664_v26 = vand.u32 2147483647, %v654_v10  ;;  %vm660_vm15 = vweird.f32 %v654_v10 }
 0x21e   : > { %1635 = vrcp.f32 %v702_v11  ;;  %v714_v24 = vand.u32 2147483648, %v702_v11  ;;  %v712_v28 = vand.u32 2147483647, %v702_v11  ;;  %vm708_vm1 = vweird.f32 %v702_v11 }
 0x21f   : > { %v667_v33 = vor.u32 1.1754944e-38, %v666_v23  ;;  %vm665_vm4 = vcmp.eq.f32.partialorder %v664_v26, 8.507059e+37 }
 0x220   : > { %v715_v35 = vor.u32 1.1754944e-38, %v714_v24  ;;  %vm713_vm5 = vcmp.eq.f32.partialorder %v712_v28, 8.507059e+37 }
 0x222   : > { %v1632_v14 = vpop.eup %1631 }
 0x223   : > { %v780_v16 = vadd.f32 1.0, %v1632_v14  ;;  %v1634_v17 = vpop.eup %1633  ;;  %v2064_v14 = vld [vmem:[#allocation8 + $0x4] ss:$0 sm:$0xff] (%p614_p1) }
 0x224   : > { %v1636_v18 = vpop.eup %1635  ;;  %v656_v19 = vmul.f32 %v1634_v17, %v654_v10  ;;  %vm661_vm13 = vweird.f32 %v1634_v17 }
 0x225   : > { %1637 = vrcp.f32 %v780_v16  ;;  %v704_v20 = vmul.f32 %v1636_v18, %v702_v11  ;;  %vm709_vm14 = vweird.f32 %v1636_v18  ;;  %vm662_vm2 = vmor %vm660_vm15, %vm661_vm13  ;;  %v792_v47 = vand.u32 2147483648, %v780_v16 }
 0x226   : > { %1639 = vtanh.f32 %v746_v15  ;;  %v657_v21 = vsub.f32 1.0, %v656_v19  ;;  %vm710_vm3 = vmor %vm708_vm1, %vm709_vm14  ;;  %vm786_vm7 = vweird.f32 %v780_v16  ;;  %v790_v48 = vand.u32 2147483647, %v780_v16  ;;  %v2066_v15 = vld [vmem:[#allocation8 + $0x5] ss:$0 sm:$0xff] (%p614_p1) }
 0x227   : > { %v705_v22 = vsub.f32 1.0, %v704_v20  ;;  %v793_v50 = vor.u32 1.1754944e-38, %v792_v47 }
 0x228   : > { %v658_v25 = vmul.f32 %v1634_v17, %v657_v21  ;;  %vm791_vm9 = vcmp.eq.f32.partialorder %v790_v48, 8.507059e+37 }
 0x229   : > { %v706_v27 = vmul.f32 %v1636_v18, %v705_v22 }
 0x22a   : > { %v659_v30 = vadd.f32 %v1634_v17, %v658_v25 }
 0x22b   : > { %v1638_v29 = vpop.eup %1637  ;;  %v707_v34 = vadd.f32 %v1636_v18, %v706_v27 }
 0x22c   : > { %v1640_v31 = vpop.eup %1639  ;;  %v782_v32 = vmul.f32 %v1638_v29, %v780_v16  ;;  %v663_v36 = vsel %vm662_vm2, %v1634_v17, %v659_v30  ;;  %vm787_vm6 = vweird.f32 %v1638_v29  ;;  %v2068_v16 = vld [vmem:[#allocation8 + $0x6] ss:$0 sm:$0xff] (%p614_p1)  ;;  %v2070_v17 = vld [vmem:[#allocation8 + $0x7] ss:$0 sm:$0xff] (%p614_p1) }
 0x22d   : > { %v668_v43 = vsel %vm665_vm4, %v667_v33, %v663_v36  ;;  %v711_v44 = vsel %vm710_vm3, %v1636_v18, %v707_v34  ;;  %vm788_vm8 = vmor %vm786_vm7, %vm787_vm6 }
 0x22e   : > { %v783_v42 = vsub.f32 1.0, %v782_v32  ;;  %v716_v45 = vsel %vm713_vm5, %v715_v35, %v711_v44  ;;  %v798_v37 = vmul.f32 %v1640_v31, %v668_v43 }
 0x22f   : > { %v797_v39 = vmul.f32 %v796_v41, %v716_v45 }
 0x230   : > { %v784_v38 = vmul.f32 %v1638_v29, %v783_v42 }
 0x231   : > { %v799_v40 = vadd.f32 %v798_v37, %v797_v39 }
 0x232   : > { %v785_v46 = vadd.f32 %v1638_v29, %v784_v38 }
 0x233   : > { %1641 = vtanh.f32 %v799_v40  ;;  %802 = vst.msk [vmem:[#allocation3] sm:$0xff] %vm49_vm0, %v799_v40 }
 0x234   : > { %v789_v49 = vsel %vm788_vm8, %v1638_v29, %v785_v46  ;;  %1171 = vst.msk [vmem:[#allocation3] sm:$0xff] (%p614_p1), %vm49_vm0, %v1745_v0 }
 0x235   : > { %v794_v52 = vsel %vm791_vm9, %v793_v50, %v789_v49 }
 0x239   : > { %v1642_v51 = vpop.eup %1641  ;;  %616 = sbr.rel (!%p614_p1) target bundleno = 394 (0x18a), region = 119 }
 0x23a   : > { %v801_v53 = vmul.f32 %v1642_v51, %v794_v52 }
 0x23c   : > { %803 = vst.msk [vmem:[#allocation2] sm:$0xff] %vm49_vm0, %v801_v53 }
 0x23d   : > { %805 = vst.msk [vmem:[%s804_s17] sm:$0xff] %vm49_vm0, %v801_v53 }
 0x23e   :  { %1170 = vst.msk [vmem:[#allocation2] sm:$0xff] %vm49_vm0, %v1745_v0  ;;  %v815_v0 = vld [vmem:[#allocation6 + $0x80] sm:$0xff] }
 0x23f   :  { %863 = vmatpush.msra.mxu0 %v815_v0 }
 0x244   :  { %v988_v3 = vld [vmem:[#allocation4] sm:$0xff]  ;;  %v989_v7 = vld [vmem:[#allocation4 + $0x8] sm:$0xff]  ;;  %v990_v8 = vld [vmem:[#allocation4 + $0x10] sm:$0xff] }
 0x245   :  { %1530 = vmatmul.msk.f32.vlgmr.msra.gmra.mxu2 %vm49_vm0, %v988_v3  ;;  %1538 = vmatmul.msk.f32.vlgmr.msra.gmra.mxu3 %vm49_vm0, %v988_v3  ;;  %v991_v9 = vld [vmem:[#allocation4 + $0x18] sm:$0xff]  ;;  %v992_v10 = vld [vmem:[#allocation4 + $0x20] sm:$0xff]  ;;  %v993_v11 = vld [vmem:[#allocation4 + $0x28] sm:$0xff] }
 0x246   :  { %1514 = vmatmul.msk.f32.vlgmr.msra.gmra.mxu0 %vm49_vm0, %v988_v3  ;;  %1522 = vmatmul.msk.f32.vlgmr.msra.gmra.mxu1 %vm49_vm0, %v988_v3  ;;  %v994_v12 = vld [vmem:[#allocation4 + $0x30] sm:$0xff]  ;;  %v995_v13 = vld [vmem:[#allocation4 + $0x38] sm:$0xff] }
 0x24d   :  { %1531 = vmatmul.msk.f32.gmra.mxu2 %vm49_vm0, %v989_v7  ;;  %1539 = vmatmul.msk.f32.gmra.mxu3 %vm49_vm0, %v989_v7 }
 0x24e   :  { %1515 = vmatmul.msk.f32.gmra.mxu0 %vm49_vm0, %v989_v7  ;;  %1523 = vmatmul.msk.f32.gmra.mxu1 %vm49_vm0, %v989_v7 }
 0x255   :  { %1532 = vmatmul.msk.f32.gmra.mxu2 %vm49_vm0, %v990_v8  ;;  %1540 = vmatmul.msk.f32.gmra.mxu3 %vm49_vm0, %v990_v8 }
 0x256   :  { %1516 = vmatmul.msk.f32.gmra.mxu0 %vm49_vm0, %v990_v8  ;;  %1524 = vmatmul.msk.f32.gmra.mxu1 %vm49_vm0, %v990_v8 }
 0x25d   :  { %1533 = vmatmul.msk.f32.gmra.mxu2 %vm49_vm0, %v991_v9  ;;  %1541 = vmatmul.msk.f32.gmra.mxu3 %vm49_vm0, %v991_v9 }
 0x25e   :  { %1517 = vmatmul.msk.f32.gmra.mxu0 %vm49_vm0, %v991_v9  ;;  %1525 = vmatmul.msk.f32.gmra.mxu1 %vm49_vm0, %v991_v9 }
 0x265   :  { %1534 = vmatmul.msk.f32.gmra.mxu2 %vm49_vm0, %v992_v10  ;;  %1542 = vmatmul.msk.f32.gmra.mxu3 %vm49_vm0, %v992_v10 }
 0x266   :  { %1518 = vmatmul.msk.f32.gmra.mxu0 %vm49_vm0, %v992_v10  ;;  %1526 = vmatmul.msk.f32.gmra.mxu1 %vm49_vm0, %v992_v10 }
 0x26d   :  { %1535 = vmatmul.msk.f32.gmra.mxu2 %vm49_vm0, %v993_v11  ;;  %1543 = vmatmul.msk.f32.gmra.mxu3 %vm49_vm0, %v993_v11 }
 0x26e   :  { %1519 = vmatmul.msk.f32.gmra.mxu0 %vm49_vm0, %v993_v11  ;;  %1527 = vmatmul.msk.f32.gmra.mxu1 %vm49_vm0, %v993_v11 }
 0x275   :  { %1536 = vmatmul.msk.f32.gmra.mxu2 %vm49_vm0, %v994_v12  ;;  %1544 = vmatmul.msk.f32.gmra.mxu3 %vm49_vm0, %v994_v12 }
 0x276   :  { %1520 = vmatmul.msk.f32.gmra.mxu0 %vm49_vm0, %v994_v12  ;;  %1528 = vmatmul.msk.f32.gmra.mxu1 %vm49_vm0, %v994_v12 }
 0x27d   :  { %1537 = vmatmul.msk.f32.gmra.mxu2 %vm49_vm0, %v995_v13  ;;  %1545 = vmatmul.msk.f32.gmra.mxu3 %vm49_vm0, %v995_v13 }
 0x27e   :  { %1521 = vmatmul.msk.f32.gmra.mxu0 %vm49_vm0, %v995_v13  ;;  %1529 = vmatmul.msk.f32.gmra.mxu1 %vm49_vm0, %v995_v13 }
 0x2c3   :  { %v865_v18 = vpop.f32.mrf.mxu0  ;;  %v956_v19 = vpop.f32.mrf.mxu1 }
 0x2c4   :  { %v866_v20 = vadd.f32 %v2064_v14, %v865_v18  ;;  %v957_v21 = vadd.f32 %v2066_v15, %v956_v19 }
 0x2c6   :  { %889 = vst.msk [vmem:[#allocation5] sm:$0xff] %vm49_vm0, %v866_v20 }
 0x2c7   :  { %980 = vst.msk [vmem:[#allocation5 + $0x40] sm:$0xff] %vm49_vm0, %v957_v21 }
 0x2c8   :  { %v1047_v22 = vpop.f32.mrf.mxu2  ;;  %v1138_v23 = vpop.f32.mrf.mxu3 }
 0x2c9   :  { %v1048_v24 = vadd.f32 %v2068_v16, %v1047_v22  ;;  %v1139_v25 = vadd.f32 %v2070_v17, %v1138_v23 }
 0x2cb   :  { %1071 = vst.msk [vmem:[#allocation5 + $0x80] sm:$0xff] %vm49_vm0, %v1048_v24  ;;  %v868_v26 = vpop.f32.mrf.mxu0  ;;  %v959_v27 = vpop.f32.mrf.mxu1 }
 0x2cc   :  { %1162 = vst.msk [vmem:[#allocation5 + $0xc0] sm:$0xff] %vm49_vm0, %v1139_v25  ;;  %v869_v28 = vadd.f32 %v2064_v14, %v868_v26  ;;  %v960_v29 = vadd.f32 %v2066_v15, %v959_v27 }
 0x2ce   :  { %890 = vst.msk [vmem:[#allocation5 + $0x8] sm:$0xff] %vm49_vm0, %v869_v28 }
 0x2cf   :  { %981 = vst.msk [vmem:[#allocation5 + $0x48] sm:$0xff] %vm49_vm0, %v960_v29 }
 0x2d0   :  { %v1050_v30 = vpop.f32.mrf.mxu2  ;;  %v1141_v31 = vpop.f32.mrf.mxu3 }
 0x2d1   :  { %v1051_v32 = vadd.f32 %v2068_v16, %v1050_v30  ;;  %v1142_v33 = vadd.f32 %v2070_v17, %v1141_v31 }
 0x2d3   :  { %1072 = vst.msk [vmem:[#allocation5 + $0x88] sm:$0xff] %vm49_vm0, %v1051_v32  ;;  %v871_v34 = vpop.f32.mrf.mxu0  ;;  %v962_v35 = vpop.f32.mrf.mxu1 }
 0x2d4   :  { %1163 = vst.msk [vmem:[#allocation5 + $0xc8] sm:$0xff] %vm49_vm0, %v1142_v33  ;;  %v872_v36 = vadd.f32 %v2064_v14, %v871_v34  ;;  %v963_v41 = vadd.f32 %v2066_v15, %v962_v35 }
 0x2d6   :  { %891 = vst.msk [vmem:[#allocation5 + $0x10] sm:$0xff] %vm49_vm0, %v872_v36 }
 0x2d7   :  { %982 = vst.msk [vmem:[#allocation5 + $0x50] sm:$0xff] %vm49_vm0, %v963_v41 }
 0x2d8   :  { %v1053_v42 = vpop.f32.mrf.mxu2  ;;  %v1144_v43 = vpop.f32.mrf.mxu3 }
 0x2d9   :  { %v1054_v44 = vadd.f32 %v2068_v16, %v1053_v42  ;;  %v1145_v45 = vadd.f32 %v2070_v17, %v1144_v43 }
 0x2db   :  { %1073 = vst.msk [vmem:[#allocation5 + $0x90] sm:$0xff] %vm49_vm0, %v1054_v44  ;;  %v874_v37 = vpop.f32.mrf.mxu0  ;;  %v965_v38 = vpop.f32.mrf.mxu1 }
 0x2dc   :  { %1164 = vst.msk [vmem:[#allocation5 + $0xd0] sm:$0xff] %vm49_vm0, %v1145_v45  ;;  %v875_v39 = vadd.f32 %v2064_v14, %v874_v37  ;;  %v966_v40 = vadd.f32 %v2066_v15, %v965_v38 }
 0x2de   :  { %892 = vst.msk [vmem:[#allocation5 + $0x18] sm:$0xff] %vm49_vm0, %v875_v39 }
 0x2df   :  { %983 = vst.msk [vmem:[#allocation5 + $0x58] sm:$0xff] %vm49_vm0, %v966_v40 }
 0x2e0   :  { %v1056_v46 = vpop.f32.mrf.mxu2  ;;  %v1147_v47 = vpop.f32.mrf.mxu3 }
 0x2e1   :  { %v1057_v48 = vadd.f32 %v2068_v16, %v1056_v46  ;;  %v1148_v49 = vadd.f32 %v2070_v17, %v1147_v47 }
 0x2e3   :  { %1074 = vst.msk [vmem:[#allocation5 + $0x98] sm:$0xff] %vm49_vm0, %v1057_v48  ;;  %v877_v50 = vpop.f32.mrf.mxu0  ;;  %v968_v51 = vpop.f32.mrf.mxu1 }
 0x2e4   :  { %1165 = vst.msk [vmem:[#allocation5 + $0xd8] sm:$0xff] %vm49_vm0, %v1148_v49  ;;  %v878_v52 = vadd.f32 %v2064_v14, %v877_v50  ;;  %v969_v53 = vadd.f32 %v2066_v15, %v968_v51 }
 0x2e6   :  { %893 = vst.msk [vmem:[#allocation5 + $0x20] sm:$0xff] %vm49_vm0, %v878_v52 }
 0x2e7   :  { %984 = vst.msk [vmem:[#allocation5 + $0x60] sm:$0xff] %vm49_vm0, %v969_v53 }
 0x2e8   :  { %v1059_v54 = vpop.f32.mrf.mxu2  ;;  %v1150_v55 = vpop.f32.mrf.mxu3 }
 0x2e9   :  { %v1060_v56 = vadd.f32 %v2068_v16, %v1059_v54  ;;  %v1151_v57 = vadd.f32 %v2070_v17, %v1150_v55 }
 0x2eb   :  { %1075 = vst.msk [vmem:[#allocation5 + $0xa0] sm:$0xff] %vm49_vm0, %v1060_v56  ;;  %v880_v58 = vpop.f32.mrf.mxu0  ;;  %v971_v59 = vpop.f32.mrf.mxu1 }
 0x2ec   :  { %1166 = vst.msk [vmem:[#allocation5 + $0xe0] sm:$0xff] %vm49_vm0, %v1151_v57  ;;  %v881_v60 = vadd.f32 %v2064_v14, %v880_v58  ;;  %v972_v61 = vadd.f32 %v2066_v15, %v971_v59 }
 0x2ee   :  { %894 = vst.msk [vmem:[#allocation5 + $0x28] sm:$0xff] %vm49_vm0, %v881_v60 }
 0x2ef   :  { %985 = vst.msk [vmem:[#allocation5 + $0x68] sm:$0xff] %vm49_vm0, %v972_v61 }
 0x2f0   :  { %v1062_v62 = vpop.f32.mrf.mxu2  ;;  %v1153_v63 = vpop.f32.mrf.mxu3 }
 0x2f1   :  { %v1063_v1 = vadd.f32 %v2068_v16, %v1062_v62  ;;  %v1154_v2 = vadd.f32 %v2070_v17, %v1153_v63 }
 0x2f3   :  { %1076 = vst.msk [vmem:[#allocation5 + $0xa8] sm:$0xff] %vm49_vm0, %v1063_v1  ;;  %v883_v3 = vpop.f32.mrf.mxu0  ;;  %v974_v4 = vpop.f32.mrf.mxu1 }
 0x2f4   :  { %1167 = vst.msk [vmem:[#allocation5 + $0xe8] sm:$0xff] %vm49_vm0, %v1154_v2  ;;  %v884_v5 = vadd.f32 %v2064_v14, %v883_v3  ;;  %v975_v0 = vadd.f32 %v2066_v15, %v974_v4 }
 0x2f6   :  { %895 = vst.msk [vmem:[#allocation5 + $0x30] sm:$0xff] %vm49_vm0, %v884_v5 }
 0x2f7   :  { %986 = vst.msk [vmem:[#allocation5 + $0x70] sm:$0xff] %vm49_vm0, %v975_v0 }
 0x2f8   :  { %v1065_v6 = vpop.f32.mrf.mxu2  ;;  %v1156_v7 = vpop.f32.mrf.mxu3 }
 0x2f9   :  { %v1066_v8 = vadd.f32 %v2068_v16, %v1065_v6  ;;  %v1157_v9 = vadd.f32 %v2070_v17, %v1156_v7 }
 0x2fb   :  { %1077 = vst.msk [vmem:[#allocation5 + $0xb0] sm:$0xff] %vm49_vm0, %v1066_v8  ;;  %v886_v10 = vpop.f32.mrf.mxu0  ;;  %v977_v11 = vpop.f32.mrf.mxu1 }
 0x2fc   :  { %1168 = vst.msk [vmem:[#allocation5 + $0xf0] sm:$0xff] %vm49_vm0, %v1157_v9  ;;  %v887_v12 = vadd.f32 %v2064_v14, %v886_v10  ;;  %v978_v13 = vadd.f32 %v2066_v15, %v977_v11 }
 0x2fe   :  { %896 = vst.msk [vmem:[#allocation5 + $0x38] sm:$0xff] %vm49_vm0, %v887_v12 }
 0x2ff   :  { %987 = vst.msk [vmem:[#allocation5 + $0x78] sm:$0xff] %vm49_vm0, %v978_v13 }
 0x300   :  { %v1068_v18 = vpop.f32.mrf.mxu2  ;;  %v1159_v19 = vpop.f32.mrf.mxu3 }
 0x301   :  { %v1069_v20 = vadd.f32 %v2068_v16, %v1068_v18  ;;  %v1160_v21 = vadd.f32 %v2070_v17, %v1159_v19 }
 0x303   :  { %1078 = vst.msk [vmem:[#allocation5 + $0xb8] sm:$0xff] %vm49_vm0, %v1069_v20 }
 0x304   :  { %1169 = vst.msk [vmem:[#allocation5 + $0xf8] sm:$0xff] %vm49_vm0, %v1160_v21 }
 0x305 LB: > { %v1550_v14 = vld [vmem:[%s2209_s2 + $0x118] sm:$0xff]  ;;  %v1549_v17 = vld [vmem:[%s2209_s2 + $0x110] sm:$0xff]  ;;  %v1548_v24 = vld [vmem:[%s2209_s2 + $0x108] sm:$0xff]  ;;  %s1546_s22 = sshll.u32 %s1737_s0, 3  ;;  %s1177_s0 = sadd.s32 1, %s1737_s0   ;;  %s1737_s0 = sphi %s2136_s0, %s1177_s0  }
 0x306   : > { %v1558_v15 = vld [vmem:[%s2209_s2 + $0x138] sm:$0xff]  ;;  %1202 = vmatpush.msra.mxu0 %v1550_v14  ;;  %v1557_v22 = vld [vmem:[%s2209_s2 + $0x130] sm:$0xff]  ;;  %v1556_v25 = vld [vmem:[%s2209_s2 + $0x128] sm:$0xff]  ;;  %s1180_s23 = scalar_lea.vmem [#allocation5], %s1546_s22  ;;  %s1364_s26 = scalar_lea.vmem %s2211_s4, %s1546_s22 }
 0x307   : > { %v1573_v16 = vld [vmem:[%s2209_s2 + $0x178] sm:$0xff]  ;;  %1250 = vmatpush.msra.mxu1 %v1558_v15  ;;  %v1572_v23 = vld [vmem:[%s2209_s2 + $0x170] sm:$0xff]  ;;  %v1571_v26 = vld [vmem:[%s2209_s2 + $0x168] sm:$0xff]  ;;  %p1174_p2 = scmp.ge.s32.totalorder %s1177_s0, 8  }
 0x308   : > { %1328 = vmatpush.msra.mxu3 %v1573_v16  ;;  %1203 = vmatpush.msra.mxu0 %v1549_v17  ;;  %v1547_v27 = vld [vmem:[%s2209_s2 + $0x100] sm:$0xff]  ;;  %v1566_v29 = vld [vmem:[%s2209_s2 + $0x158] sm:$0xff]  ;;  %v1565_v32 = vld [vmem:[%s2209_s2 + $0x150] sm:$0xff] }
 0x309   : > { %1251 = vmatpush.msra.mxu1 %v1557_v22  ;;  %v1555_v28 = vld [vmem:[%s2209_s2 + $0x120] sm:$0xff]  ;;  %1298 = vmatpush.msra.mxu2 %v1566_v29  ;;  %v1564_v33 = vld [vmem:[%s2209_s2 + $0x148] sm:$0xff] }
 0x30a   : > { %1329 = vmatpush.msra.mxu3 %v1572_v23  ;;  %1204 = vmatpush.msra.mxu0 %v1548_v24  ;;  %v1570_v30 = vld [vmem:[%s2209_s2 + $0x160] sm:$0xff]  ;;  %v1356_v12 = vld [vmem:[#allocation3] sm:$0xff] }
 0x30b   : > { %1252 = vmatpush.msra.mxu1 %v1556_v25  ;;  %v1179_v31 = vld [vmem:[#allocation2] sm:$0xff]  ;;  %1299 = vmatpush.msra.mxu2 %v1565_v32 }
 0x30c   : > { %1330 = vmatpush.msra.mxu3 %v1571_v26  ;;  %1205 = vmatpush.msra.mxu0 %v1547_v27  ;;  %v1563_v34 = vld [vmem:[%s2209_s2 + $0x140] sm:$0xff] }
 0x30d   : > { %1253 = vmatpush.msra.mxu1 %v1555_v28  ;;  %1551 = vmatmul.msk.f32.vlgmr.msra.gmra.mxu0 %vm49_vm0, %v1179_v31  ;;  %v1181_v35 = vld [vmem:[%s1180_s23] sm:$0xff] }
 0x30e   : > { %1331 = vmatpush.msra.mxu3 %v1570_v30  ;;  %1559 = vmatmul.msk.f32.vlgmr.msra.gmra.mxu1 %vm49_vm0, %v1179_v31  ;;  %v1554_v36 = vld [vmem:[%s1180_s23 + $0x40] sm:$0xff] }
 0x30f   : > { %1574 = vmatmul.msk.f32.vlgmr.msra.gmra.mxu3 %vm49_vm0, %v1179_v31  ;;  %1300 = vmatpush.msra.mxu2 %v1564_v33  ;;  %v1569_v38 = vld [vmem:[%s1180_s23 + $0xc0] sm:$0xff] }
 0x310   : > { %v1562_v51 = vld [vmem:[%s1180_s23 + $0x80] sm:$0xff] }
 0x311   : > { %1301 = vmatpush.msra.mxu2 %v1563_v34 }
 0x312   : > { %1567 = vmatmul.msk.f32.vlgmr.msra.gmra.mxu2 %vm49_vm0, %v1179_v31 }
 0x38a   : > { %v1207_v41 = vpop.f32.mrf.mxu0 }
 0x38b   : > { %v1210_v42 = vadd.f32 %v1207_v41, %v1181_v35  ;;  %v1255_v43 = vpop.f32.mrf.mxu1 }
 0x38c   : > { %v1258_v44 = vadd.f32 %v1554_v36, %v1255_v43 }
 0x38d   : > { %v1552_v45 = vmul.f32 -1.442695, %v1210_v42 }
 0x38e   : > { %v1560_v37 = vmul.f32 -1.442695, %v1258_v44 }
 0x38f   : > { %1647 = vpow2.f32 %v1552_v45 }
 0x390   : > { %1649 = vpow2.f32 %v1560_v37 }
 0x392   : > { %v1333_v39 = vpop.f32.mrf.mxu3 }
 0x393   : > { %v1336_v40 = vadd.f32 %v1569_v38, %v1333_v39 }
 0x395   : > { %v1575_v46 = vmul.f32 -1.442695, %v1336_v40  ;;  %v1648_v47 = vpop.eup %1647  ;;  %v1303_v52 = vpop.f32.mrf.mxu2 }
 0x396   : > { %v1650_v48 = vpop.eup %1649  ;;  %v1214_v49 = vadd.f32 1.0, %v1648_v47  ;;  %v1306_v54 = vadd.f32 %v1562_v51, %v1303_v52 }
 0x397   : > { %1651 = vpow2.f32 %v1575_v46  ;;  %v1262_v50 = vadd.f32 1.0, %v1650_v48 }
 0x398   : > { %1653 = vrcp.f32 %v1214_v49  ;;  %v1226_v62 = vand.u32 2147483648, %v1214_v49  ;;  %v1224_v2 = vand.u32 2147483647, %v1214_v49  ;;  %vm1220_vm12 = vweird.f32 %v1214_v49 }
 0x399   : > { %1655 = vrcp.f32 %v1262_v50  ;;  %v1274_v63 = vand.u32 2147483648, %v1262_v50  ;;  %v1272_v4 = vand.u32 2147483647, %v1262_v50  ;;  %vm1268_vm13 = vweird.f32 %v1262_v50 }
 0x39a   : > { %v1227_v8 = vor.u32 1.1754944e-38, %v1226_v62  ;;  %vm1225_vm1 = vcmp.eq.f32.partialorder %v1224_v2, 8.507059e+37 }
 0x39b   : > { %v1275_v10 = vor.u32 1.1754944e-38, %v1274_v63  ;;  %vm1273_vm2 = vcmp.eq.f32.partialorder %v1272_v4, 8.507059e+37 }
 0x39d   : > { %v1652_v53 = vpop.eup %1651 }
 0x39e   : > { %v1340_v55 = vadd.f32 1.0, %v1652_v53  ;;  %v1654_v56 = vpop.eup %1653 }
 0x39f   : > { %v1656_v57 = vpop.eup %1655  ;;  %v1216_v58 = vmul.f32 %v1654_v56, %v1214_v49  ;;  %vm1221_vm10 = vweird.f32 %v1654_v56 }
 0x3a0   : > { %1657 = vrcp.f32 %v1340_v55  ;;  %v1264_v59 = vmul.f32 %v1656_v57, %v1262_v50  ;;  %vm1269_vm11 = vweird.f32 %v1656_v57  ;;  %vm1222_vm14 = vmor %vm1220_vm12, %vm1221_vm10  ;;  %v1352_v22 = vand.u32 2147483648, %v1340_v55 }
 0x3a1   : > { %1659 = vtanh.f32 %v1306_v54  ;;  %v1217_v60 = vsub.f32 1.0, %v1216_v58  ;;  %vm1270_vm15 = vmor %vm1268_vm13, %vm1269_vm11  ;;  %vm1346_vm4 = vweird.f32 %v1340_v55  ;;  %v1350_v23 = vand.u32 2147483647, %v1340_v55 }
 0x3a2   : > { %v1265_v61 = vsub.f32 1.0, %v1264_v59  ;;  %v1353_v25 = vor.u32 1.1754944e-38, %v1352_v22 }
 0x3a3   : > { %v1218_v1 = vmul.f32 %v1654_v56, %v1217_v60  ;;  %vm1351_vm6 = vcmp.eq.f32.partialorder %v1350_v23, 8.507059e+37 }
 0x3a4   : > { %v1266_v3 = vmul.f32 %v1656_v57, %v1265_v61 }
 0x3a5   : > { %v1219_v0 = vadd.f32 %v1654_v56, %v1218_v1 }
 0x3a6   : > { %v1658_v5 = vpop.eup %1657  ;;  %v1267_v9 = vadd.f32 %v1656_v57, %v1266_v3 }
 0x3a7   : > { %v1660_v6 = vpop.eup %1659  ;;  %v1342_v7 = vmul.f32 %v1658_v5, %v1340_v55  ;;  %v1223_v11 = vsel %vm1222_vm14, %v1654_v56, %v1219_v0  ;;  %vm1347_vm3 = vweird.f32 %v1658_v5 }
 0x3a8   : > { %v1228_v18 = vsel %vm1225_vm1, %v1227_v8, %v1223_v11  ;;  %v1271_v19 = vsel %vm1270_vm15, %v1656_v57, %v1267_v9  ;;  %vm1348_vm5 = vmor %vm1346_vm4, %vm1347_vm3 }
 0x3a9   : > { %v1343_v13 = vsub.f32 1.0, %v1342_v7  ;;  %v1276_v20 = vsel %vm1273_vm2, %v1275_v10, %v1271_v19  ;;  %v1358_v21 = vmul.f32 %v1660_v6, %v1228_v18 }
 0x3aa   : > { %v1357_v15 = vmul.f32 %v1356_v12, %v1276_v20 }
 0x3ab   : > { %v1344_v14 = vmul.f32 %v1658_v5, %v1343_v13 }
 0x3ac   : > { %v1359_v16 = vadd.f32 %v1358_v21, %v1357_v15 }
 0x3ad   : > { %v1345_v17 = vadd.f32 %v1658_v5, %v1344_v14 }
 0x3ae   : > { %1661 = vtanh.f32 %v1359_v16  ;;  %1362 = vst.msk [vmem:[#allocation3] sm:$0xff] %vm49_vm0, %v1359_v16 }
 0x3af   : > { %v1349_v24 = vsel %vm1348_vm5, %v1658_v5, %v1345_v17 }
 0x3b0   : > { %v1354_v27 = vsel %vm1351_vm6, %v1353_v25, %v1349_v24 }
 0x3b4   : > { %v1662_v26 = vpop.eup %1661  ;;  %1176 = sbr.rel (!%p1174_p2) target bundleno = 773 (0x305), region = 130 }
 0x3b5   : > { %v1361_v28 = vmul.f32 %v1662_v26, %v1354_v27 }
 0x3b7   : > { %1363 = vst.msk [vmem:[#allocation2] sm:$0xff] %vm49_vm0, %v1361_v28 }
 0x3b8   : > { %1365 = vst.msk [vmem:[%s1364_s26] sm:$0xff] %vm49_vm0, %v1361_v28 }
 0x3b9   :  { %1370 = vsyncpa [#allocation7], 1 }
 0x3ba   :  { %1371 = vsyncpa [#allocation9], 1 }

</bundles_post_ra>
